<compile_context>
chip_gen: v7x
topology: tpu7x:2x2x1
jax: 0.10.0
libtpu: 0.0.40
codegen_flags: <defaults>
</compile_context>

<pallas_src>
import numpy as np

import jax
import jax.numpy as jnp
from jax import lax
from jax.experimental import pallas as pl
from jax.experimental.pallas import tpu as pltpu


def _make_fusionloss_kernel(tc: int, H: int, W: int,
                            ir_c_is_one: bool, use_mxu: bool):
    """Kernel body for one (tc, H, W) channel-chunk of one batch element."""

    def kernel(*refs):
        if use_mxu:
            band_v_ref, band_d_ref, vis_ref, ir_ref, gen_ref, out_ref = refs
        else:
            vis_ref, ir_ref, gen_ref, out_ref = refs

        # Boundary masks for the implicit zero halo, hoisted to tiny shapes
        # ((1,W) / (H,1)) and broadcast inside the selects.
        col = lax.broadcasted_iota(jnp.int32, (1, W), 1)
        col_has_lf = col >= 1            # x[i, j-1] exists
        col_has_rt = col <= W - 2        # x[i, j+1] exists
        if not use_mxu:
            row = lax.broadcasted_iota(jnp.int32, (H, 1), 0)
            row_has_up = row >= 1        # x[i-1, j] exists
            row_has_dn = row <= H - 2    # x[i+1, j] exists
        else:
            band_v = band_v_ref[...]     # (H,H) vertical [1,2,1]
            band_d = band_d_ref[...]     # (H,H) vertical [1,0,-1]

        def sobel_abs(x):                # x: (H, W) f32
            # Separable Sobel (cross-correlation, zero padding):
            #   gx = [1,2,1]^T (x) [-1,0,1],   gy = [1,0,-1]^T (x) [1,2,1]
            # Horizontal passes: lane rolls (XLU) + edge selects.
            xl = jnp.where(col_has_lf, pltpu.roll(x, 1, axis=1), 0.0)
            xr = jnp.where(col_has_rt, pltpu.roll(x, W - 1, axis=1), 0.0)
            h_diff = xr - xl             # horizontal [-1, 0, 1]
            h_smth = xl + 2.0 * x + xr   # horizontal [ 1, 2, 1]
            if use_mxu:
                # Vertical passes on the MXU (zero halo implicit in the band).
                gx = jnp.dot(band_v, h_diff, preferred_element_type=jnp.float32,
                             precision=lax.Precision.HIGHEST)
                gy = jnp.dot(band_d, h_smth, preferred_element_type=jnp.float32,
                             precision=lax.Precision.HIGHEST)
            else:
                # Vertical passes on VPU/XLU (v5e & older chips).
                gx = (jnp.where(row_has_up, pltpu.roll(h_diff, 1, axis=0), 0.0)
                      + 2.0 * h_diff
                      + jnp.where(row_has_dn, pltpu.roll(h_diff, H - 1, axis=0), 0.0))
                gy = (jnp.where(row_has_up, pltpu.roll(h_smth, 1, axis=0), 0.0)
                      - jnp.where(row_has_dn, pltpu.roll(h_smth, H - 1, axis=0), 0.0))
            return jnp.abs(gx) + jnp.abs(gy)

        if ir_c_is_one:
            # Single IR plane for the whole chunk: hoist its Sobel out of the loop.
            ir0 = ir_ref[0].astype(jnp.float32)
            g_ir0 = sobel_abs(ir0)

        def body(i, carry):
            s_in, s_grad = carry
            vis = vis_ref[i].astype(jnp.float32)
            gen = gen_ref[i].astype(jnp.float32)
            if ir_c_is_one:
                ir, g_ir = ir0, g_ir0
            else:
                ir = ir_ref[i].astype(jnp.float32)
                g_ir = sobel_abs(ir)
            g_vis = sobel_abs(vis)
            g_gen = sobel_abs(gen)
            s_in = s_in + jnp.sum(jnp.abs(gen - jnp.maximum(vis, ir)),
                                  keepdims=True)
            s_grad = s_grad + jnp.sum(jnp.abs(g_gen - jnp.maximum(g_vis, g_ir)),
                                      keepdims=True)
            return s_in, s_grad

        init = (jnp.zeros((1, 1), jnp.float32), jnp.zeros((1, 1), jnp.float32))
        s_in, s_grad = lax.fori_loop(0, tc, body, init, unroll=(tc <= 8))

        # Lane-dense (1, 1, 128) partial-sum row:
        #   lane 0 = intensity partial sum, lane 1 = gradient partial sum.
        lane = lax.broadcasted_iota(jnp.int32, (1, 1, 128), 2)
        out_ref[...] = (jnp.where(lane == 0, s_in[0, 0], 0.0)
                        + jnp.where(lane == 1, s_grad[0, 0], 0.0))

    return kernel


def _device_config():
    """Per-generation defaults (block bytes per input, scoped VMEM, MXU use)."""
    kind = ""
    try:
        kind = jax.devices()[0].device_kind.lower()
    except Exception:
        pass
    if ("v5 lite" in kind) or ("v5e" in kind) or ("v5litepod" in kind):
        # v5e: closest to HBM-bound -> big blocks, generous VMEM, keep the
        # vertical Sobel on VPU/XLU (its 197 TF/s MXU would be the bottleneck).
        return dict(use_mxu=False, target_block_bytes=4 << 20,
                    vmem_limit_bytes=64 << 20)
    if "v6" in kind:
        return dict(use_mxu=True, target_block_bytes=2 << 20,
                    vmem_limit_bytes=64 << 20)
    if ("v7" in kind) or ("7x" in kind):
        # v7x: only 64 MiB VMEM per TensorCore -> cap scoped VMEM.
        return dict(use_mxu=True, target_block_bytes=2 << 20,
                    vmem_limit_bytes=48 << 20)
    if any(t in kind for t in ("v2", "v3", "v4")):
        return dict(use_mxu=False, target_block_bytes=2 << 20,
                    vmem_limit_bytes=48 << 20)
    # Unknown / future chips: assume a big MXU.
    return dict(use_mxu=True, target_block_bytes=2 << 20,
                vmem_limit_bytes=48 << 20)


def fusionloss(image_vis, image_ir, generate_img, *, use_mxu=None,
               target_block_bytes=None, vmem_limit_bytes=None):
    """JAX/Pallas equivalent of Fusionloss.forward -> (loss_in, loss_grad)."""
    B, C, H, W = image_vis.shape
    assert generate_img.shape == (B, C, H, W)
    ir_B, ir_C, ir_H, ir_W = image_ir.shape
    assert ir_H == H and ir_W == W and ir_B in (1, B) and ir_C in (1, C), (
        "image_ir must be expandable to image_vis's shape")

    cfg = _device_config()
    if use_mxu is None:
        use_mxu = cfg["use_mxu"]
    if target_block_bytes is None:
        target_block_bytes = cfg["target_block_bytes"]
    if vmem_limit_bytes is None:
        vmem_limit_bytes = cfg["vmem_limit_bytes"]

    # Channels per grid step: largest divisor of C whose block stays under
    # target_block_bytes while leaving >= 4 total grid steps (2 per v7x core).
    itemsize = jnp.dtype(image_vis.dtype).itemsize
    plane_bytes = H * W * itemsize
    min_steps = min(4, B * C)
    tc = 1
    for cand in range(1, C + 1):
        if C % cand:
            continue
        if cand > 1 and cand * plane_bytes > target_block_bytes:
            continue
        if B * (C // cand) < min_steps:
            continue
        tc = cand
    n_c = C // tc

    # BlockSpecs: the batch dim is squeezed (None); the IR image keeps its own
    # (possibly single-plane) window so it is never expanded in HBM.
    vis_spec = pl.BlockSpec((None, tc, H, W), lambda b, c: (b, c, 0, 0))
    ir_tc = tc if ir_C == C else 1
    if ir_B == B and ir_C == C:
        ir_map = lambda b, c: (b, c, 0, 0)
    elif ir_B == B:
        ir_map = lambda b, c: (b, 0, 0, 0)
    elif ir_C == C:
        ir_map = lambda b, c: (0, c, 0, 0)
    else:
        ir_map = lambda b, c: (0, 0, 0, 0)
    ir_spec = pl.BlockSpec((None, ir_tc, H, W), ir_map)

    in_specs = []
    args = []
    if use_mxu:
        # Banded (H,H) matrices realizing the vertical Sobel passes:
        #   gx[i] = h_diff[i-1] + 2*h_diff[i] + h_diff[i+1]   (band_v)
        #   gy[i] = h_smth[i-1] - h_smth[i+1]                 (band_d)
        i = np.arange(H)
        d = i[:, None] - i[None, :]
        band_v = ((d == 0) * 2.0 + (np.abs(d) == 1) * 1.0).astype(np.float32)
        band_d = ((d == 1) * 1.0 - (d == -1) * 1.0).astype(np.float32)
        band_spec = pl.BlockSpec((H, H), lambda b, c: (0, 0))
        in_specs += [band_spec, band_spec]
        args += [jnp.asarray(band_v), jnp.asarray(band_d)]
    in_specs += [vis_spec, ir_spec, vis_spec]
    args += [image_vis, image_ir, generate_img]

    kernel = _make_fusionloss_kernel(tc, H, W, ir_C == 1, use_mxu)

    per_px = 3 * (14 + (4 * H if use_mxu else 14)) + 12
    flops = int(B * C * H * W * per_px)
    bytes_accessed = int((2 * B * C + ir_B * ir_C) * H * W * itemsize
                         + B * n_c * 128 * 4)

    partial = pl.pallas_call(
        kernel,
        out_shape=jax.ShapeDtypeStruct((B * n_c, 1, 128), jnp.float32),
        grid=(B, n_c),
        in_specs=in_specs,
        out_specs=pl.BlockSpec((1, 1, 128), lambda b, c: (b * n_c + c, 0, 0)),
        compiler_params=pltpu.CompilerParams(
            dimension_semantics=("parallel", "parallel"),
            vmem_limit_bytes=int(vmem_limit_bytes)),
        cost_estimate=pl.CostEstimate(
            flops=flops, transcendentals=0, bytes_accessed=bytes_accessed),
    )(*args)

    count = jnp.float32(B * C * H * W)
    loss_in = jnp.sum(partial[:, 0, 0]) / count
    loss_grad = jnp.sum(partial[:, 0, 1]) / count
    return loss_in, loss_grad


def _reference(image_vis, image_ir, generate_img):
    """Pure-JAX reference of Fusionloss.forward (for the sanity check)."""
    image_ir = jnp.broadcast_to(image_ir, image_vis.shape)
    kx = jnp.array([[-1., 0., 1.], [-2., 0., 2.], [-1., 0., 1.]], jnp.float32)
    ky = jnp.array([[1., 2., 1.], [0., 0., 0.], [-1., -2., -1.]], jnp.float32)

    def sobel_abs(x):
        B, C, H, W = x.shape
        p = x.reshape(B * C, 1, H, W).astype(jnp.float32)

        def conv(a, k):
            return jax.lax.conv_general_dilated(
                a, k[None, None], window_strides=(1, 1),
                padding=((1, 1), (1, 1)),
                dimension_numbers=("NCHW", "OIHW", "NCHW"))

        r = jnp.abs(conv(p, kx)) + jnp.abs(conv(p, ky))
        return r.reshape(B, C, H, W)

    loss_in = jnp.mean(jnp.abs(generate_img - jnp.maximum(image_vis, image_ir)))
    loss_grad = jnp.mean(jnp.abs(
        sobel_abs(generate_img)
        - jnp.maximum(sobel_abs(image_vis), sobel_abs(image_ir))))
    return loss_in, loss_grad


if __name__ == "__main__":
    key = jax.random.PRNGKey(0)

    configs = [
        # (B, C, H, W, ir_C, use_mxu)
        (2, 4, 16, 16, 1, True),    # single-plane IR (torch .expand path), MXU vertical Sobel
        (2, 4, 16, 16, 4, False),   # full-channel IR, roll/select vertical Sobel (v5e path)
        (2, 3, 10, 20, 1, None),    # non-(8,128)-aligned spatial dims, auto per-chip config
    ]
    keys = jax.random.split(key, 3 * len(configs))
    for idx, (B, C, H, W, ir_C, use_mxu) in enumerate(configs):
        k1, k2, k3 = keys[3 * idx:3 * idx + 3]
        image_vis = jax.random.uniform(k1, (B, C, H, W), dtype=jnp.float32)
        image_ir = jax.random.uniform(k2, (B, ir_C, H, W), dtype=jnp.float32)
        generate_img = jax.random.uniform(k3, (B, C, H, W), dtype=jnp.float32)

        loss_in, loss_grad = fusionloss(image_vis, image_ir, generate_img,
                                        use_mxu=use_mxu)
        jax.block_until_ready((loss_in, loss_grad))

        ref_in, ref_grad = _reference(image_vis, image_ir, generate_img)
        assert jnp.allclose(loss_in, ref_in, atol=1e-5, rtol=1e-4), (
            idx, "loss_in", loss_in, ref_in)
        assert jnp.allclose(loss_grad, ref_grad, atol=1e-5, rtol=1e-4), (
            idx, "loss_grad", loss_grad, ref_grad)

    print("KERNEL_OK")
</pallas_src>

<mosaic_0001>
module attributes {stable_mosaic.version = 11 : i64} {
  func.func @kernel(%arg0: i32, %arg1: i32, %arg2: memref<16x16xf32, #tpu.memory_space<vmem>>, %arg3: memref<16x16xf32, #tpu.memory_space<vmem>>, %arg4: memref<1x2x16x16xf32, #tpu.memory_space<vmem>>, %arg5: memref<1x1x16x16xf32, #tpu.memory_space<vmem>>, %arg6: memref<1x2x16x16xf32, #tpu.memory_space<vmem>>, %arg7: memref<1x1x128xf32, #tpu.memory_space<vmem>>) attributes {dimension_semantics = [#tpu.dimension_semantics<parallel>, #tpu.dimension_semantics<parallel>], iteration_bounds = array<i64: 2, 2>, scalar_prefetch = 0 : i64, scratch_operands = 0 : i64, tpu.core_type = #tpu.core_type<tc>, window_params = [{pipeline_mode = #tpu.pipeline_mode<synchronous>, transform_indices = @transform_0, window_bounds = array<i64: 16, 16>}, {pipeline_mode = #tpu.pipeline_mode<synchronous>, transform_indices = @transform_1, window_bounds = array<i64: 16, 16>}, {transform_indices = @transform_2, window_bounds = array<i64: 1, 2, 16, 16>}, {transform_indices = @transform_3, window_bounds = array<i64: 1, 1, 16, 16>}, {transform_indices = @transform_4, window_bounds = array<i64: 1, 2, 16, 16>}, {transform_indices = @transform_5, window_bounds = array<i64: 1, 1, 128>}]} {
    %0 = tpu.iota {dimensions = array<i32: 1>} : vector<1x16xi32>
    %c1_i32 = arith.constant 1 : i32
    %1 = vector.broadcast %c1_i32 : i32 to vector<1x16xi32>
    %2 = arith.cmpi sge, %0, %1 : vector<1x16xi32>
    %c14_i32 = arith.constant 14 : i32
    %3 = vector.broadcast %c14_i32 : i32 to vector<1x16xi32>
    %4 = arith.cmpi sle, %0, %3 : vector<1x16xi32>
    %c0 = arith.constant 0 : index
    %c0_0 = arith.constant 0 : index
    %5 = vector.load %arg2[%c0, %c0_0] : memref<16x16xf32, #tpu.memory_space<vmem>>, vector<16x16xf32>
    %c0_1 = arith.constant 0 : index
    %c0_2 = arith.constant 0 : index
    %6 = vector.load %arg3[%c0_1, %c0_2] : memref<16x16xf32, #tpu.memory_space<vmem>>, vector<16x16xf32>
    %c0_3 = arith.constant 0 : index
    %c0_4 = arith.constant 0 : index
    %c0_5 = arith.constant 0 : index
    %c0_6 = arith.constant 0 : index
    %7 = vector.load %arg5[%c0_3, %c0_4, %c0_5, %c0_6] : memref<1x1x16x16xf32, #tpu.memory_space<vmem>>, vector<1x1x16x16xf32>
    %8 = vector.shape_cast %7 : vector<1x1x16x16xf32> to vector<16x16xf32>
    %c1_i32_7 = arith.constant 1 : i32
    %9 = tpu.dynamic_rotate %8 by %c1_i32_7 dim 1 : vector<16x16xf32>, i32 -> vector<16x16xf32>
    %cst = arith.constant 0.000000e+00 : f32
    %10 = vector.shape_cast %2 : vector<1x16xi1> to vector<1x16xi1>
    %11 = vector.broadcast %10 : vector<1x16xi1> to vector<16x16xi1>
    %12 = vector.broadcast %cst : f32 to vector<16x16xf32>
    %13 = arith.select %11, %9, %12 : vector<16x16xi1>, vector<16x16xf32>
    %c15_i32 = arith.constant 15 : i32
    %14 = tpu.dynamic_rotate %8 by %c15_i32 dim 1 : vector<16x16xf32>, i32 -> vector<16x16xf32>
    %cst_8 = arith.constant 0.000000e+00 : f32
    %15 = vector.shape_cast %4 : vector<1x16xi1> to vector<1x16xi1>
    %16 = vector.broadcast %15 : vector<1x16xi1> to vector<16x16xi1>
    %17 = vector.broadcast %cst_8 : f32 to vector<16x16xf32>
    %18 = arith.select %16, %14, %17 : vector<16x16xi1>, vector<16x16xf32>
    %19 = arith.subf %18, %13 : vector<16x16xf32>
    %cst_9 = arith.constant 2.000000e+00 : f32
    %20 = vector.broadcast %cst_9 : f32 to vector<16x16xf32>
    %21 = arith.mulf %20, %8 : vector<16x16xf32>
    %22 = arith.addf %13, %21 : vector<16x16xf32>
    %23 = arith.addf %22, %18 : vector<16x16xf32>
    %cst_10 = arith.constant dense<0.000000e+00> : vector<16x16xf32>
    %24 = tpu.matmul %5, %19, %cst_10 {dimension_numbers = #tpu.dot_dimension_numbers<[1], [0], [0], [1], [0, 0, 1, 1], [], []>, precision = #tpu.contract_precision<fp32>} : vector<16x16xf32>, vector<16x16xf32>, vector<16x16xf32> -> vector<16x16xf32>
    %cst_11 = arith.constant dense<0.000000e+00> : vector<16x16xf32>
    %25 = tpu.matmul %6, %23, %cst_11 {dimension_numbers = #tpu.dot_dimension_numbers<[1], [0], [0], [1], [0, 0, 1, 1], [], []>, precision = #tpu.contract_precision<fp32>} : vector<16x16xf32>, vector<16x16xf32>, vector<16x16xf32> -> vector<16x16xf32>
    %26 = math.absf %24 : vector<16x16xf32>
    %27 = math.absf %25 : vector<16x16xf32>
    %28 = arith.addf %26, %27 : vector<16x16xf32>
    %cst_12 = arith.constant 0.000000e+00 : f32
    %29 = vector.broadcast %cst_12 : f32 to vector<1x1xf32>
    %cst_13 = arith.constant 0.000000e+00 : f32
    %30 = vector.broadcast %cst_13 : f32 to vector<1x1xf32>
    %c0_i32 = arith.constant 0 : i32
    %c0_14 = arith.constant 0 : index
    %31 = arith.index_cast %c0_i32 : i32 to index
    %c0_15 = arith.constant 0 : index
    %c0_16 = arith.constant 0 : index
    %32 = vector.load %arg4[%c0_14, %31, %c0_15, %c0_16] : memref<1x2x16x16xf32, #tpu.memory_space<vmem>>, vector<1x1x16x16xf32>
    %33 = vector.shape_cast %32 : vector<1x1x16x16xf32> to vector<16x16xf32>
    %c0_17 = arith.constant 0 : index
    %34 = arith.index_cast %c0_i32 : i32 to index
    %c0_18 = arith.constant 0 : index
    %c0_19 = arith.constant 0 : index
    %35 = vector.load %arg6[%c0_17, %34, %c0_18, %c0_19] : memref<1x2x16x16xf32, #tpu.memory_space<vmem>>, vector<1x1x16x16xf32>
    %36 = vector.shape_cast %35 : vector<1x1x16x16xf32> to vector<16x16xf32>
    %c1_i32_20 = arith.constant 1 : i32
    %37 = tpu.dynamic_rotate %33 by %c1_i32_20 dim 1 : vector<16x16xf32>, i32 -> vector<16x16xf32>
    %cst_21 = arith.constant 0.000000e+00 : f32
    %38 = vector.shape_cast %2 : vector<1x16xi1> to vector<1x16xi1>
    %39 = vector.broadcast %38 : vector<1x16xi1> to vector<16x16xi1>
    %40 = vector.broadcast %cst_21 : f32 to vector<16x16xf32>
    %41 = arith.select %39, %37, %40 : vector<16x16xi1>, vector<16x16xf32>
    %c15_i32_22 = arith.constant 15 : i32
    %42 = tpu.dynamic_rotate %33 by %c15_i32_22 dim 1 : vector<16x16xf32>, i32 -> vector<16x16xf32>
    %cst_23 = arith.constant 0.000000e+00 : f32
    %43 = vector.shape_cast %4 : vector<1x16xi1> to vector<1x16xi1>
    %44 = vector.broadcast %43 : vector<1x16xi1> to vector<16x16xi1>
    %45 = vector.broadcast %cst_23 : f32 to vector<16x16xf32>
    %46 = arith.select %44, %42, %45 : vector<16x16xi1>, vector<16x16xf32>
    %47 = arith.subf %46, %41 : vector<16x16xf32>
    %cst_24 = arith.constant 2.000000e+00 : f32
    %48 = vector.broadcast %cst_24 : f32 to vector<16x16xf32>
    %49 = arith.mulf %48, %33 : vector<16x16xf32>
    %50 = arith.addf %41, %49 : vector<16x16xf32>
    %51 = arith.addf %50, %46 : vector<16x16xf32>
    %cst_25 = arith.constant dense<0.000000e+00> : vector<16x16xf32>
    %52 = tpu.matmul %5, %47, %cst_25 {dimension_numbers = #tpu.dot_dimension_numbers<[1], [0], [0], [1], [0, 0, 1, 1], [], []>, precision = #tpu.contract_precision<fp32>} : vector<16x16xf32>, vector<16x16xf32>, vector<16x16xf32> -> vector<16x16xf32>
    %cst_26 = arith.constant dense<0.000000e+00> : vector<16x16xf32>
    %53 = tpu.matmul %6, %51, %cst_26 {dimension_numbers = #tpu.dot_dimension_numbers<[1], [0], [0], [1], [0, 0, 1, 1], [], []>, precision = #tpu.contract_precision<fp32>} : vector<16x16xf32>, vector<16x16xf32>, vector<16x16xf32> -> vector<16x16xf32>
    %54 = math.absf %52 : vector<16x16xf32>
    %55 = math.absf %53 : vector<16x16xf32>
    %56 = arith.addf %54, %55 : vector<16x16xf32>
    %c1_i32_27 = arith.constant 1 : i32
    %57 = tpu.dynamic_rotate %36 by %c1_i32_27 dim 1 : vector<16x16xf32>, i32 -> vector<16x16xf32>
    %cst_28 = arith.constant 0.000000e+00 : f32
    %58 = vector.shape_cast %2 : vector<1x16xi1> to vector<1x16xi1>
    %59 = vector.broadcast %58 : vector<1x16xi1> to vector<16x16xi1>
    %60 = vector.broadcast %cst_28 : f32 to vector<16x16xf32>
    %61 = arith.select %59, %57, %60 : vector<16x16xi1>, vector<16x16xf32>
    %c15_i32_29 = arith.constant 15 : i32
    %62 = tpu.dynamic_rotate %36 by %c15_i32_29 dim 1 : vector<16x16xf32>, i32 -> vector<16x16xf32>
    %cst_30 = arith.constant 0.000000e+00 : f32
    %63 = vector.shape_cast %4 : vector<1x16xi1> to vector<1x16xi1>
    %64 = vector.broadcast %63 : vector<1x16xi1> to vector<16x16xi1>
    %65 = vector.broadcast %cst_30 : f32 to vector<16x16xf32>
    %66 = arith.select %64, %62, %65 : vector<16x16xi1>, vector<16x16xf32>
    %67 = arith.subf %66, %61 : vector<16x16xf32>
    %cst_31 = arith.constant 2.000000e+00 : f32
    %68 = vector.broadcast %cst_31 : f32 to vector<16x16xf32>
    %69 = arith.mulf %68, %36 : vector<16x16xf32>
    %70 = arith.addf %61, %69 : vector<16x16xf32>
    %71 = arith.addf %70, %66 : vector<16x16xf32>
    %cst_32 = arith.constant dense<0.000000e+00> : vector<16x16xf32>
    %72 = tpu.matmul %5, %67, %cst_32 {dimension_numbers = #tpu.dot_dimension_numbers<[1], [0], [0], [1], [0, 0, 1, 1], [], []>, precision = #tpu.contract_precision<fp32>} : vector<16x16xf32>, vector<16x16xf32>, vector<16x16xf32> -> vector<16x16xf32>
    %cst_33 = arith.constant dense<0.000000e+00> : vector<16x16xf32>
    %73 = tpu.matmul %6, %71, %cst_33 {dimension_numbers = #tpu.dot_dimension_numbers<[1], [0], [0], [1], [0, 0, 1, 1], [], []>, precision = #tpu.contract_precision<fp32>} : vector<16x16xf32>, vector<16x16xf32>, vector<16x16xf32> -> vector<16x16xf32>
    %74 = math.absf %72 : vector<16x16xf32>
    %75 = math.absf %73 : vector<16x16xf32>
    %76 = arith.addf %74, %75 : vector<16x16xf32>
    %77 = arith.maximumf %33, %8 : vector<16x16xf32>
    %78 = arith.subf %36, %77 : vector<16x16xf32>
    %79 = math.absf %78 : vector<16x16xf32>
    %80 = vector.shape_cast %79 : vector<16x16xf32> to vector<1x16x16xf32>
    %cst_34 = arith.constant dense<0.000000e+00> : vector<1xf32>
    %81 = vector.multi_reduction <add>, %80, %cst_34 [1, 2] : vector<1x16x16xf32> to vector<1xf32>
    %82 = vector.shape_cast %81 : vector<1xf32> to vector<1x1x1xf32>
    %83 = vector.extract %82[0, 0, 0] : f32 from vector<1x1x1xf32>
    %84 = vector.broadcast %83 : f32 to vector<1x1xf32>
    %85 = arith.addf %29, %84 : vector<1x1xf32>
    %86 = arith.maximumf %56, %28 : vector<16x16xf32>
    %87 = arith.subf %76, %86 : vector<16x16xf32>
    %88 = math.absf %87 : vector<16x16xf32>
    %89 = vector.shape_cast %88 : vector<16x16xf32> to vector<1x16x16xf32>
    %cst_35 = arith.constant dense<0.000000e+00> : vector<1xf32>
    %90 = vector.multi_reduction <add>, %89, %cst_35 [1, 2] : vector<1x16x16xf32> to vector<1xf32>
    %91 = vector.shape_cast %90 : vector<1xf32> to vector<1x1x1xf32>
    %92 = vector.extract %91[0, 0, 0] : f32 from vector<1x1x1xf32>
    %93 = vector.broadcast %92 : f32 to vector<1x1xf32>
    %94 = arith.addf %30, %93 : vector<1x1xf32>
    %c1_i32_36 = arith.constant 1 : i32
    %c0_37 = arith.constant 0 : index
    %95 = arith.index_cast %c1_i32_36 : i32 to index
    %c0_38 = arith.constant 0 : index
    %c0_39 = arith.constant 0 : index
    %96 = vector.load %arg4[%c0_37, %95, %c0_38, %c0_39] : memref<1x2x16x16xf32, #tpu.memory_space<vmem>>, vector<1x1x16x16xf32>
    %97 = vector.shape_cast %96 : vector<1x1x16x16xf32> to vector<16x16xf32>
    %c0_40 = arith.constant 0 : index
    %98 = arith.index_cast %c1_i32_36 : i32 to index
    %c0_41 = arith.constant 0 : index
    %c0_42 = arith.constant 0 : index
    %99 = vector.load %arg6[%c0_40, %98, %c0_41, %c0_42] : memref<1x2x16x16xf32, #tpu.memory_space<vmem>>, vector<1x1x16x16xf32>
    %100 = vector.shape_cast %99 : vector<1x1x16x16xf32> to vector<16x16xf32>
    %c1_i32_43 = arith.constant 1 : i32
    %101 = tpu.dynamic_rotate %97 by %c1_i32_43 dim 1 : vector<16x16xf32>, i32 -> vector<16x16xf32>
    %cst_44 = arith.constant 0.000000e+00 : f32
    %102 = vector.shape_cast %2 : vector<1x16xi1> to vector<1x16xi1>
    %103 = vector.broadcast %102 : vector<1x16xi1> to vector<16x16xi1>
    %104 = vector.broadcast %cst_44 : f32 to vector<16x16xf32>
    %105 = arith.select %103, %101, %104 : vector<16x16xi1>, vector<16x16xf32>
    %c15_i32_45 = arith.constant 15 : i32
    %106 = tpu.dynamic_rotate %97 by %c15_i32_45 dim 1 : vector<16x16xf32>, i32 -> vector<16x16xf32>
    %cst_46 = arith.constant 0.000000e+00 : f32
    %107 = vector.shape_cast %4 : vector<1x16xi1> to vector<1x16xi1>
    %108 = vector.broadcast %107 : vector<1x16xi1> to vector<16x16xi1>
    %109 = vector.broadcast %cst_46 : f32 to vector<16x16xf32>
    %110 = arith.select %108, %106, %109 : vector<16x16xi1>, vector<16x16xf32>
    %111 = arith.subf %110, %105 : vector<16x16xf32>
    %cst_47 = arith.constant 2.000000e+00 : f32
    %112 = vector.broadcast %cst_47 : f32 to vector<16x16xf32>
    %113 = arith.mulf %112, %97 : vector<16x16xf32>
    %114 = arith.addf %105, %113 : vector<16x16xf32>
    %115 = arith.addf %114, %110 : vector<16x16xf32>
    %cst_48 = arith.constant dense<0.000000e+00> : vector<16x16xf32>
    %116 = tpu.matmul %5, %111, %cst_48 {dimension_numbers = #tpu.dot_dimension_numbers<[1], [0], [0], [1], [0, 0, 1, 1], [], []>, precision = #tpu.contract_precision<fp32>} : vector<16x16xf32>, vector<16x16xf32>, vector<16x16xf32> -> vector<16x16xf32>
    %cst_49 = arith.constant dense<0.000000e+00> : vector<16x16xf32>
    %117 = tpu.matmul %6, %115, %cst_49 {dimension_numbers = #tpu.dot_dimension_numbers<[1], [0], [0], [1], [0, 0, 1, 1], [], []>, precision = #tpu.contract_precision<fp32>} : vector<16x16xf32>, vector<16x16xf32>, vector<16x16xf32> -> vector<16x16xf32>
    %118 = math.absf %116 : vector<16x16xf32>
    %119 = math.absf %117 : vector<16x16xf32>
    %120 = arith.addf %118, %119 : vector<16x16xf32>
    %c1_i32_50 = arith.constant 1 : i32
    %121 = tpu.dynamic_rotate %100 by %c1_i32_50 dim 1 : vector<16x16xf32>, i32 -> vector<16x16xf32>
    %cst_51 = arith.constant 0.000000e+00 : f32
    %122 = vector.shape_cast %2 : vector<1x16xi1> to vector<1x16xi1>
    %123 = vector.broadcast %122 : vector<1x16xi1> to vector<16x16xi1>
    %124 = vector.broadcast %cst_51 : f32 to vector<16x16xf32>
    %125 = arith.select %123, %121, %124 : vector<16x16xi1>, vector<16x16xf32>
    %c15_i32_52 = arith.constant 15 : i32
    %126 = tpu.dynamic_rotate %100 by %c15_i32_52 dim 1 : vector<16x16xf32>, i32 -> vector<16x16xf32>
    %cst_53 = arith.constant 0.000000e+00 : f32
    %127 = vector.shape_cast %4 : vector<1x16xi1> to vector<1x16xi1>
    %128 = vector.broadcast %127 : vector<1x16xi1> to vector<16x16xi1>
    %129 = vector.broadcast %cst_53 : f32 to vector<16x16xf32>
    %130 = arith.select %128, %126, %129 : vector<16x16xi1>, vector<16x16xf32>
    %131 = arith.subf %130, %125 : vector<16x16xf32>
    %cst_54 = arith.constant 2.000000e+00 : f32
    %132 = vector.broadcast %cst_54 : f32 to vector<16x16xf32>
    %133 = arith.mulf %132, %100 : vector<16x16xf32>
    %134 = arith.addf %125, %133 : vector<16x16xf32>
    %135 = arith.addf %134, %130 : vector<16x16xf32>
    %cst_55 = arith.constant dense<0.000000e+00> : vector<16x16xf32>
    %136 = tpu.matmul %5, %131, %cst_55 {dimension_numbers = #tpu.dot_dimension_numbers<[1], [0], [0], [1], [0, 0, 1, 1], [], []>, precision = #tpu.contract_precision<fp32>} : vector<16x16xf32>, vector<16x16xf32>, vector<16x16xf32> -> vector<16x16xf32>
    %cst_56 = arith.constant dense<0.000000e+00> : vector<16x16xf32>
    %137 = tpu.matmul %6, %135, %cst_56 {dimension_numbers = #tpu.dot_dimension_numbers<[1], [0], [0], [1], [0, 0, 1, 1], [], []>, precision = #tpu.contract_precision<fp32>} : vector<16x16xf32>, vector<16x16xf32>, vector<16x16xf32> -> vector<16x16xf32>
    %138 = math.absf %136 : vector<16x16xf32>
    %139 = math.absf %137 : vector<16x16xf32>
    %140 = arith.addf %138, %139 : vector<16x16xf32>
    %141 = arith.maximumf %97, %8 : vector<16x16xf32>
    %142 = arith.subf %100, %141 : vector<16x16xf32>
    %143 = math.absf %142 : vector<16x16xf32>
    %144 = vector.shape_cast %143 : vector<16x16xf32> to vector<1x16x16xf32>
    %cst_57 = arith.constant dense<0.000000e+00> : vector<1xf32>
    %145 = vector.multi_reduction <add>, %144, %cst_57 [1, 2] : vector<1x16x16xf32> to vector<1xf32>
    %146 = vector.shape_cast %145 : vector<1xf32> to vector<1x1x1xf32>
    %147 = vector.extract %146[0, 0, 0] : f32 from vector<1x1x1xf32>
    %148 = vector.broadcast %147 : f32 to vector<1x1xf32>
    %149 = arith.addf %85, %148 : vector<1x1xf32>
    %150 = arith.maximumf %120, %28 : vector<16x16xf32>
    %151 = arith.subf %140, %150 : vector<16x16xf32>
    %152 = math.absf %151 : vector<16x16xf32>
    %153 = vector.shape_cast %152 : vector<16x16xf32> to vector<1x16x16xf32>
    %cst_58 = arith.constant dense<0.000000e+00> : vector<1xf32>
    %154 = vector.multi_reduction <add>, %153, %cst_58 [1, 2] : vector<1x16x16xf32> to vector<1xf32>
    %155 = vector.shape_cast %154 : vector<1xf32> to vector<1x1x1xf32>
    %156 = vector.extract %155[0, 0, 0] : f32 from vector<1x1x1xf32>
    %157 = vector.broadcast %156 : f32 to vector<1x1xf32>
    %158 = arith.addf %94, %157 : vector<1x1xf32>
    %c2_i32 = arith.constant 2 : i32
    %159 = tpu.iota {dimensions = array<i32: 2>} : vector<1x1x128xi32>
    %c0_i32_59 = arith.constant 0 : i32
    %160 = vector.broadcast %c0_i32_59 : i32 to vector<1x1x128xi32>
    %161 = arith.cmpi eq, %159, %160 : vector<1x1x128xi32>
    %162 = vector.extract %149[0, 0] : f32 from vector<1x1xf32>
    %cst_60 = arith.constant 0.000000e+00 : f32
    %163 = vector.broadcast %162 : f32 to vector<1x1x128xf32>
    %164 = vector.broadcast %cst_60 : f32 to vector<1x1x128xf32>
    %165 = arith.select %161, %163, %164 : vector<1x1x128xi1>, vector<1x1x128xf32>
    %c1_i32_61 = arith.constant 1 : i32
    %166 = vector.broadcast %c1_i32_61 : i32 to vector<1x1x128xi32>
    %167 = arith.cmpi eq, %159, %166 : vector<1x1x128xi32>
    %168 = vector.extract %158[0, 0] : f32 from vector<1x1xf32>
    %cst_62 = arith.constant 0.000000e+00 : f32
    %169 = vector.broadcast %168 : f32 to vector<1x1x128xf32>
    %170 = vector.broadcast %cst_62 : f32 to vector<1x1x128xf32>
    %171 = arith.select %167, %169, %170 : vector<1x1x128xi1>, vector<1x1x128xf32>
    %172 = arith.addf %165, %171 : vector<1x1x128xf32>
    %c0_63 = arith.constant 0 : index
    %c0_64 = arith.constant 0 : index
    %c0_65 = arith.constant 0 : index
    %173 = vector.load %arg7[%c0_63, %c0_64, %c0_65] : memref<1x1x128xf32, #tpu.memory_space<vmem>>, vector<1x1x128xf32>
    tpu.vector_store %arg7[%c0_63, %c0_64, %c0_65], %172 {strides = array<i32>} : memref<1x1x128xf32, #tpu.memory_space<vmem>>, vector<1x1x128xf32>,
    return
  }
  func.func @transform_0(%arg0: i32, %arg1: i32) -> (i32, i32) {
    %c0_i32 = arith.constant 0 : i32
    %c0_i32_0 = arith.constant 0 : i32
    %c0_i32_1 = arith.constant 0 : i32
    return %c0_i32, %c0_i32_0 : i32, i32
  }
  func.func @transform_1(%arg0: i32, %arg1: i32) -> (i32, i32) {
    %c0_i32 = arith.constant 0 : i32
    %c0_i32_0 = arith.constant 0 : i32
    %c0_i32_1 = arith.constant 0 : i32
    return %c0_i32, %c0_i32_0 : i32, i32
  }
  func.func @transform_2(%arg0: i32, %arg1: i32) -> (i32, i32, i32, i32) {
    %c0_i32 = arith.constant 0 : i32
    %c0_i32_0 = arith.constant 0 : i32
    %c0_i32_1 = arith.constant 0 : i32
    return %arg0, %arg1, %c0_i32, %c0_i32_0 : i32, i32, i32, i32
  }
  func.func @transform_3(%arg0: i32, %arg1: i32) -> (i32, i32, i32, i32) {
    %c0_i32 = arith.constant 0 : i32
    %c0_i32_0 = arith.constant 0 : i32
    %c0_i32_1 = arith.constant 0 : i32
    %c0_i32_2 = arith.constant 0 : i32
    return %arg0, %c0_i32, %c0_i32_0, %c0_i32_1 : i32, i32, i32, i32
  }
  func.func @transform_4(%arg0: i32, %arg1: i32) -> (i32, i32, i32, i32) {
    %c0_i32 = arith.constant 0 : i32
    %c0_i32_0 = arith.constant 0 : i32
    %c0_i32_1 = arith.constant 0 : i32
    return %arg0, %arg1, %c0_i32, %c0_i32_0 : i32, i32, i32, i32
  }
  func.func @transform_5(%arg0: i32, %arg1: i32) -> (i32, i32, i32) {
    %c2_i32 = arith.constant 2 : i32
    %0 = arith.muli %arg0, %c2_i32 : i32
    %1 = arith.addi %0, %arg1 : i32
    %c0_i32 = arith.constant 0 : i32
    %c0_i32_0 = arith.constant 0 : i32
    %c0_i32_1 = arith.constant 0 : i32
    return %1, %c0_i32, %c0_i32_0 : i32, i32, i32
  }
}

</mosaic_0001>

<bundles_post_ra>
// kernel: tpu_custom_call.1
= control target key start
LH: loop header
LB: loop body
LE: loop exit
PB: predicated region body
PF: predicated region fallthrough
CT: control target
= control target key end

     0   :  { %s8501_s0 = inlined_call_operand.hbm [shape: f32[16,16], index: 0, kind: input, shape index: {}]   ;;  %s8502_s1 = inlined_call_operand.hbm [shape: f32[16,16], index: 1, kind: input, shape index: {}]   ;;  %s8503_s2 = inlined_call_operand.hbm [shape: f32[2,4,16,16], index: 2, kind: input, shape index: {}]   ;;  %s8504_s3 = inlined_call_operand.hbm [shape: f32[2,1,16,16], index: 3, kind: input, shape index: {}]   ;;  %s8505_s4 = inlined_call_operand.hbm [shape: f32[2,4,16,16], index: 4, kind: input, shape index: {}]   ;;  %s8506_s5 = inlined_call_operand.hbm [shape: f32[4,1,128], index: 5, kind: output, shape index: {}]  }
   0x1   :  { %8540 = sst [smem:[#allocation31_spill]] %s8501_s0 }
   0x2   :  { %8541 = sst [smem:[#allocation32_spill]] %s8503_s2 }
   0x3   :  { %8542 = sst [smem:[#allocation33_spill]] %s8504_s3 }
   0x4   :  { %8543 = sst [smem:[#allocation34_spill]] %s8506_s5 }
   0x5   :  { %10 = vsyncpa [#allocation3], 0 }
   0x6   :  { %11 = vsyncpa [#allocation6], 0 }
   0x7   :  { %12 = vsyncpa [#allocation4], 0 }
   0x8   :  { %14 = vsyncpa [#allocation4 + $0x1], 0  ;;  %s7469_s18 = smov 0   ;;  %s7471_s19 = smov 0  }
   0x9   :  { %s7473_s20 = smov 0   ;;  %s7475_s21 = smov 0  }
   0xa   :  { %s7477_s22 = smov 0   ;;  %s7479_s23 = smov 0  }
   0xb   :  { %s7481_s24 = smov 0   ;;  %s7483_s25 = smov 0  }
   0xc   :  { %s7485_s26 = smov 0   ;;  %s7487_s27 = smov 0  }
   0xd   :  { %s7489_s28 = smov 0   ;;  %s7491_s29 = smov 0  }
   0xe   :  { %s7493_s30 = smov 0   ;;  %s7495_s6 = smov 0  }
   0xf LB: > { %8544 = sst [smem:[#allocation17_spill]] %s7374_s18  ;;  %s7536_s7 = sadd.s32 4294967295, %s7426_s6   ;;  %s7426_s6 = sphi %s7495_s6, %s20_s6   ;;  %s7422_s30 = sphi %s7493_s30, %s8609_s30   ;;  %s7418_s29 = sphi %s7491_s29, %s8608_s29   ;;  %s7414_s28 = sphi %s7489_s28, %s8607_s28   ;;  %s7410_s27 = sphi %s7487_s27, %s8618_s27   ;;  %s7406_s26 = sphi %s7485_s26, %s8617_s26   ;;  %s7402_s25 = sphi %s7483_s25, %s8616_s25   ;;  %s7398_s24 = sphi %s7481_s24, %s8604_s24   ;;  %s7394_s23 = sphi %s7479_s23, %s8615_s23   ;;  %s7390_s22 = sphi %s7477_s22, %s8614_s22   ;;  %s7386_s21 = sphi %s7475_s21, %s8613_s21   ;;  %s7382_s20 = sphi %s7473_s20, %s8612_s20   ;;  %s7378_s19 = sphi %s7471_s19, %s8611_s19   ;;  %s7374_s18 = sphi %s7469_s18, %s8603_s18  }
  0x10   : > { %8545 = sst [smem:[#allocation18_spill]] %s7378_s19  ;;  %s5901_s8 = sadd.s32 4294967294, %s7426_s6  }
  0x11   : > { %8546 = sst [smem:[#allocation19_spill]] %s7402_s25  ;;  %p96_p0 = scmp.ne.s32.totalorder %s7402_s25, %s7398_s24 }
  0x12   : > { %8547 = sst [smem:[#allocation20_spill]] %s7410_s27  ;;  %p8509_p1 = scmp.eq.s32.totalorder %s7536_s7, 0 }
  0x13   : > { %8548 = sst [smem:[#allocation21_spill]] %s7414_s28  ;;  %p122_p2 = scmp.ne.s32.totalorder %s7390_s22, %s7386_s21 }
  0x14   : > { %8549 = sst [smem:[#allocation22_spill]] %s7418_s29  ;;  %p7545_p3 = por %p8509_p1, %p96_p0 }
  0x15   : > { %8550 = sst [smem:[#allocation23_spill]] %s7422_s30  ;;  %p177_p4 = scmp.ne.s32.totalorder %s7382_s20, %s7378_s19 }
  0x16   : > { %8551 = sst [smem:[#allocation24_spill]] %s7536_s7  ;;  %p7553_p5 = por %p122_p2, %p8509_p1 }
  0x17   : > { %s8552_s10 = scalar_select %p7545_p3, 1, 0 }
  0x18   : > { %s8554_s11 = scalar_select %p7553_p5, 1, 0 }
  0x19   : > { %8553 = sst [smem:[#allocation25_spill]] %s8552_s10  ;;  %p178_p6 = scmp.eq.s32.totalorder %s7536_s7, 3 }
  0x1a   : > { %8555 = sst [smem:[#allocation26_spill]] %s8554_s11  ;;  %p183_p7 = scmp.ne.s32.totalorder %s7378_s19, %s7374_s18 }
  0x1b   : > { %p184_p8 = scmp.eq.s32.totalorder %s5901_s8, 3  ;;  %p7560_p9 = por %p178_p6, %p177_p4 }
  0x1c   : > { %p5904_p10 = scmp.ge.s32.totalorder %s7426_s6, 1  ;;  %p191_p12 = scmp.lt.s32.totalorder %s7426_s6, 5 }
  0x1d   : > { %s8556_s12 = scalar_select %p7560_p9, 1, 0 }
  0x1e   : > { %p7565_p11 = por %p184_p8, %p183_p7  ;;  %p7570_p13 = pnand %p5904_p10, %p191_p12 }
  0x1f   : > { %8557 = sst [smem:[#allocation27_spill]] %s8556_s12  ;;  %s7428_s15 = smov [#allocation2]  }
  0x20   : > { %s8558_s13 = scalar_select %p7565_p11, 1, 0 }
  0x21   : > { %s8560_s14 = scalar_select %p7570_p13, 1, 0 }
  0x22   : > { %8559 = sst [smem:[#allocation28_spill]] %s8558_s13  ;;  %s203_s16 = sshll.u32 %s7428_s15, 4  ;;  %s204_s16 = int_to_ptr.vmem [resolvable:$true] %s203_s16 }
  0x23   : > { %p6966_p0 = pneg %p7570_p13  ;;  %s8562_s0 = sld [smem:[#allocation31_spill]] }
  0x25   : > { %p7578_p2 = pnand %p6966_p0, %p8509_p1 }
  0x27   : > { %p8531_p6 = pneg %p7578_p2 }
  0x29   : > { %s7118_s8 = scalar_lea.hbm %s8562_s0, 256 }
  0x2a   : > { %p7119_p4 = scmp.ne.s32.totalorder %s8562_s0, %s7118_s8  ;;  %p7125_p10 = scmp.lt.u32.totalorder %s7118_s8, %s8562_s0 }
  0x2c   : > { %p7121_p7 = pnand %p8531_p6, %p7119_p4 }
  0x2e   : > { %p7122_p8 = pneg %p7121_p7 }
  0x30   : > { %p7127_p12 = pnand %p7125_p10, %p7122_p8 }
  0x32   : > { %7130 = shalt.err (!%p7127_p12)
}
  0x33   : > { %s7131_s21 = scalar_lea.vmem %s204_s16, 256  ;;  %p7139_p9 = scmp.lt.s32.totalorder %s204_s16, %s204_s16 }
  0x34   : > { %p7132_p0 = scmp.ne.s32.totalorder %s204_s16, %s7131_s21  ;;  %p7140_p5 = scmp.lt.s32.totalorder %s7131_s21, %s7131_s21 }
  0x36   : > { %p7134_p1 = pnand %p7132_p0, %p8531_p6  ;;  %p7141_p3 = por %p7140_p5, %p7139_p9 }
  0x38   : > { %p7135_p11 = pneg %p7134_p1 }
  0x3a   : > { %p7142_p13 = pnand %p7141_p3, %p7135_p11 }
  0x3c   : > { %7145 = shalt.err (!%p7142_p13)
}
  0x3d   : > { %s8515_s9 = smov 128   ;;  %s8517_s18 = smov 8  }
  0x3e   : > { %6969 = dma.hbm_to_vmem [thread:$0]  (!%p7578_p2), %s8562_s0, 256, %s204_s16, [#allocation3], %s8515_s9, %s8515_s9, %s8517_s18  }
  0x3f   : > { %s29_s8 = sadd.s32 1, %s7418_s29  ;;  %s32_s15 = sadd.s32 1, %s7422_s30 }
  0x40   : > { %p30_p1 = scmp.ge.s32.totalorder %s29_s8, 2  ;;  %s83_s21 = sadd.s32 1, %s7406_s26 }
  0x41   : > { %p90_p3 = scmp.ne.s32.totalorder %s7406_s26, %s7402_s25  ;;  %p8533_p5 = scmp.eq.s32.totalorder %s7426_s6, 0 }
  0x42   : > { %s8620_s8 = smov (%p30_p1, %s29_s8), 0  ;;  %s8622_s15 = smov (!%p30_p1, %s32_s15), %s7422_s30 }
  0x43   : > { %8563 = sst [smem:[#allocation29_spill]] %s8620_s8  ;;  %s79_s5 = ssub.s32 %s7418_s29, %s8620_s8 }
  0x44   : > { %p34_p9 = scmp.ge.s32.totalorder %s8622_s15, 2  ;;  %s5902_s13 = sshll.u32 %s7422_s30, 1 }
  0x45   : > { %p7621_p11 = por %p8533_p5, %p90_p3  ;;  %s161_s24 = sadd.s32 %s7418_s29, %s5902_s13 }
  0x46   : > { %s8624_s15 = smov (%p34_p9, %s8622_s15), 0  ;;  %p8532_p13 = scmp.lt.s32.totalorder %s7426_s6, 4 }
  0x47   : > { %8565 = sst [smem:[#allocation30_spill]] %s8624_s15  ;;  %s230_s9 = sand.u32 1, %s7426_s6  }
  0x48   : > { %s7632_s18 = ssub.s32 %s7422_s30, %s8624_s15  ;;  %s5903_s0 = sshll.u32 %s8624_s15, 1 }
  0x49   : > { %s80_s12 = sor.u32 %s79_s5, %s7632_s18  ;;  %s163_s13 = sadd.s32 %s5903_s0, %s8620_s8 }
  0x4a   : > { %p81_p7 = scmp.eq.s32.totalorder %s80_s12, 0  ;;  %s164_s27 = ssub.s32 %s161_s24, %s163_s13 }
  0x4b   : > { %p165_p8 = scmp.eq.s32.totalorder %s164_s27, 0  ;;  %s232_s28 = sand.u32 1, %s7406_s26  }
  0x4c   : > { %s7639_s19 = scalar_select %p81_p7, %s7406_s26, %s83_s21  }
  0x4d   : > { %s7642_s11 = sshll.u32 %s232_s28, 5  ;;  %s5935_s10 = sshll.u32 %s7418_s29, 2 }
  0x4e   : > { %s8566_s25 = sadd.s32 1, %s7382_s20  ;;  %s5911_s15 = sshll.u32 %s7422_s30, 3 }
  0x4f   : > { %s7648_s7 = scalar_select %p165_p8, %s7382_s20, %s8566_s25  }
  0x50   : > { %s7651_s5 = sadd.s32 %s5935_s10, %s5911_s15  ;;  %s234_s12 = scalar_lea.vmem [#allocation7], %s7642_s11 }
  0x51   : > { %s244_s0 = sshll.u32 %s234_s12, 4  ;;  %s8534_s8 = sshll.u32 %s7651_s5, 7  ;;  %s7655_s0 = int_to_ptr.vmem [resolvable:$true] %s244_s0 }
  0x52   : > { %s8567_s2 = sld [smem:[#allocation32_spill]]  ;;  %p7668_p10 = pnand %p8532_p13, %p7621_p11 }
  0x53   : > { %s5936_s10 = sshll.u32 %s7422_s30, 8  ;;  %s7673_s15 = scalar_lea.sflag [#allocation3], %s230_s9 }
  0x54   : > { %s8568_s25 = scalar_select %p7668_p10, 1, 0 }
  0x55   : > { %p8536_p0 = pneg %p7668_p10 }
  0x58   : > { %s7662_s28 = scalar_lea.hbm %s8567_s2, %s8534_s8  ;;  %s7151_s12 = scalar_lea.hbm %s8567_s2, 2048 }
  0x59   : > { %s7146_s24 = scalar_lea.hbm %s7662_s28, 512  ;;  %p7152_p9 = scmp.lt.u32.totalorder %s7662_s28, %s8567_s2 }
  0x5a   : > { %p7147_p12 = scmp.ne.s32.totalorder %s7662_s28, %s7146_s24  ;;  %p7153_p11 = scmp.lt.u32.totalorder %s7151_s12, %s7146_s24 }
  0x5b   : > { %p7155_p8 = scmp.lt.u32.totalorder %s7146_s24, %s7662_s28 }
  0x5c   : > { %p7149_p1 = pnand %p8536_p0, %p7147_p12  ;;  %p7154_p7 = por %p7153_p11, %p7152_p9 }
  0x5e   : > { %p7150_p3 = pneg %p7149_p1  ;;  %p7156_p6 = por %p7155_p8, %p7154_p7 }
  0x60   : > { %p7157_p13 = pnand %p7156_p6, %p7150_p3 }
  0x62   : > { %7160 = shalt.err (!%p7157_p13)
}
  0x63   : > { %s7161_s9 = scalar_lea.vmem %s7655_s0, 512  ;;  %s7431_s16 = smov [#allocation7]  }
  0x64   : > { %p7162_p12 = scmp.ne.s32.totalorder %s7655_s0, %s7161_s9  ;;  %s7166_s13 = sshll.u32 %s7431_s16, 4  ;;  %s7167_s13 = int_to_ptr.vmem [resolvable:$false] %s7166_s13 }
  0x65   : > { %s7168_s27 = scalar_lea.vmem %s7167_s13, 1024  ;;  %p7169_p4 = scmp.lt.s32.totalorder %s7655_s0, %s7167_s13 }
  0x66   : > { %p7164_p1 = pnand %p7162_p12, %p8536_p0  ;;  %p7170_p9 = scmp.lt.s32.totalorder %s7168_s27, %s7161_s9 }
  0x68   : > { %p7165_p5 = pneg %p7164_p1  ;;  %p7171_p11 = por %p7170_p9, %p7169_p4 }
  0x6a   : > { %p7172_p7 = pnand %p7171_p11, %p7165_p5 }
  0x6c   : > { %7175 = shalt.err (!%p7172_p7)
}
  0x6d   : > { %s8569_s24 = smov 8   ;;  %s8570_s12 = smov 128  }
  0x6e   : > { %6976 = dma.hbm_to_vmem [thread:$0]  (!%p7668_p10), %s7662_s28, 512, %s7655_s0, %s7673_s15, %s8570_s12, %s8570_s12, %s8569_s24  }
  0x6f   : > { %s109_s21 = sadd.s32 1, %s7394_s23  ;;  %p116_p6 = scmp.ne.s32.totalorder %s7394_s23, %s7390_s22 }
  0x70   : > { %p8571_p5 = scmp.eq.s32.totalorder %s7632_s18, 0  ;;  %p8572_p13 = scmp.eq.s32.totalorder %s7426_s6, 0 }
  0x71   : > { %s256_s16 = sand.u32 1, %s7394_s23   ;;  %s8573_s3 = sld [smem:[#allocation33_spill]] }
  0x72   : > { %s7710_s9 = scalar_select %p8571_p5, %s7394_s23, %s109_s21  }
  0x73   : > { %p118_p4 = por %p116_p6, %p8572_p13  ;;  %s5913_s13 = sshll.u32 %s256_s16, 4 }
  0x74   : > { %p8574_p3 = scmp.lt.s32.totalorder %s7426_s6, 4  ;;  %s258_s18 = scalar_lea.vmem [#allocation8], %s5913_s13 }
  0x75   : > { %s265_s28 = sshll.u32 %s258_s18, 4  ;;  %s7728_s28 = int_to_ptr.vmem [resolvable:$true] %s265_s28 }
  0x76   : > { %p7724_p8 = pnand %p8574_p3, %p118_p4 }
  0x77   : > { %s7720_s2 = scalar_lea.hbm %s8573_s3, %s5936_s10  ;;  %s7181_s16 = scalar_lea.hbm %s8573_s3, 512 }
  0x78   : > { %s7176_s21 = scalar_lea.hbm %s7720_s2, 256  ;;  %p7178_p1 = pneg %p7724_p8 }
  0x79   : > { %p7177_p12 = scmp.ne.s32.totalorder %s7720_s2, %s7176_s21  ;;  %p7182_p7 = scmp.lt.u32.totalorder %s7720_s2, %s8573_s3 }
  0x7a   : > { %p7183_p6 = scmp.lt.u32.totalorder %s7181_s16, %s7176_s21  ;;  %p7185_p13 = scmp.lt.u32.totalorder %s7176_s21, %s7720_s2 }
  0x7b   : > { %p7179_p9 = pnand %p7178_p1, %p7177_p12 }
  0x7c   : > { %p7184_p5 = por %p7183_p6, %p7182_p7 }
  0x7d   : > { %p7180_p11 = pneg %p7179_p9 }
  0x7e   : > { %p7186_p4 = por %p7185_p13, %p7184_p5 }
  0x80   : > { %p7187_p3 = pnand %p7186_p4, %p7180_p11 }
  0x82   : > { %7190 = shalt.err (!%p7187_p3)
}
  0x83   : > { %s7191_s13 = scalar_lea.vmem %s7728_s28, 256  ;;  %s7432_s18 = smov [#allocation8]  }
  0x84   : > { %p7192_p12 = scmp.ne.s32.totalorder %s7728_s28, %s7191_s13  ;;  %s7196_s8 = sshll.u32 %s7432_s18, 4  ;;  %s7197_s8 = int_to_ptr.vmem [resolvable:$false] %s7196_s8 }
  0x85   : > { %s7198_s30 = scalar_lea.vmem %s7197_s8, 512  ;;  %p7199_p10 = scmp.lt.s32.totalorder %s7728_s28, %s7197_s8 }
  0x86   : > { %p7194_p9 = pnand %p7192_p12, %p7178_p1  ;;  %p7200_p7 = scmp.lt.s32.totalorder %s7198_s30, %s7191_s13 }
  0x88   : > { %p7195_p0 = pneg %p7194_p9  ;;  %p7201_p6 = por %p7200_p7, %p7199_p10 }
  0x8a   : > { %p7202_p5 = pnand %p7201_p6, %p7195_p0 }
  0x8c   : > { %7205 = shalt.err (!%p7202_p5)
}
  0x8d   : > { %6979 = dma.hbm_to_vmem [thread:$0]  (!%p7724_p8), %s7720_s2, 256, %s7728_s28, %s7673_s15, %s8570_s12, %s8570_s12, %s8569_s24  }
  0x8e   : > { %s7433_s21 = smov [#allocation5]   ;;  %s8576_s16 = sshll.u32 %s7651_s5, 7 }
  0x8f   : > { %s216_s10 = sshll.u32 %s7433_s21, 4  ;;  %s7764_s18 = scalar_lea.hbm %s8505_s4, %s8576_s16  ;;  %s217_s10 = int_to_ptr.vmem [resolvable:$true] %s216_s10 }
  0x90   : > { %s7206_s30 = scalar_lea.hbm %s8502_s1, 256  ;;  %p8577_p0 = pneg %p7578_p2 }
  0x91   : > { %p7207_p10 = scmp.ne.s32.totalorder %s8502_s1, %s7206_s30  ;;  %p7213_p11 = scmp.lt.u32.totalorder %s7206_s30, %s8502_s1 }
  0x93   : > { %p7209_p8 = pnand %p7207_p10, %p8577_p0 }
  0x95   : > { %p7210_p1 = pneg %p7209_p8 }
  0x97   : > { %p7215_p13 = pnand %p7213_p11, %p7210_p1 }
  0x99   : > { %7218 = shalt.err (!%p7215_p13)
}
  0x9a   : > { %s7219_s5 = scalar_lea.vmem %s217_s10, 256  ;;  %p8578_p3 = pmov %p8577_p0 }
  0x9b   : > { %p7220_p4 = scmp.ne.s32.totalorder %s217_s10, %s7219_s5  ;;  %p7227_p7 = scmp.lt.s32.totalorder %s217_s10, %s217_s10 }
  0x9c   : > { %p7228_p6 = scmp.lt.s32.totalorder %s7219_s5, %s7219_s5 }
  0x9d   : > { %p7222_p12 = pnand %p7220_p4, %p8578_p3 }
  0x9e   : > { %p7229_p5 = por %p7228_p6, %p7227_p7 }
  0x9f   : > { %p7223_p9 = pneg %p7222_p12 }
  0xa1   : > { %p7230_p0 = pnand %p7229_p5, %p7223_p9 }
  0xa3   : > { %7233 = shalt.err (!%p7230_p0)
}
  0xa4   : > { %6972 = dma.hbm_to_vmem [thread:$0]  (!%p7578_p2), %s8502_s1, 256, %s217_s10, [#allocation6], %s8570_s12, %s8570_s12, %s8569_s24  }
  0xa5   : > { %s279_s21 = scalar_lea.vmem [#allocation9], %s7642_s11  ;;  %s7234_s27 = scalar_lea.hbm %s7764_s18, 512 }
  0xa6   : > { %s289_s16 = sshll.u32 %s279_s21, 4  ;;  %p7235_p10 = scmp.ne.s32.totalorder %s7764_s18, %s7234_s27  ;;  %s7790_s16 = int_to_ptr.vmem [resolvable:$true] %s289_s16 }
  0xa7   : > { %p8579_p8 = scmp.ne.s32.totalorder %s8568_s25, 0  ;;  %s7239_s8 = scalar_lea.hbm %s8505_s4, 2048 }
  0xa8   : > { %p7240_p4 = scmp.lt.u32.totalorder %s7764_s18, %s8505_s4  ;;  %p7241_p3 = scmp.lt.u32.totalorder %s7239_s8, %s7234_s27 }
  0xa9   : > { %p8580_p1 = pneg %p8579_p8  ;;  %p7243_p12 = scmp.lt.u32.totalorder %s7234_s27, %s7764_s18 }
  0xaa   : > { %p7242_p2 = por %p7241_p3, %p7240_p4 }
  0xab   : > { %p7237_p11 = pnand %p7235_p10, %p8580_p1 }
  0xac   : > { %p7244_p9 = por %p7243_p12, %p7242_p2 }
  0xad   : > { %p7238_p13 = pneg %p7237_p11 }
  0xaf   : > { %p7245_p7 = pnand %p7244_p9, %p7238_p13 }
  0xb1   : > { %7248 = shalt.err (!%p7245_p7)
}
  0xb2   : > { %s7249_s11 = scalar_lea.vmem %s7790_s16, 512  ;;  %p8581_p5 = pmov %p8580_p1 }
  0xb3   : > { %p7250_p6 = scmp.ne.s32.totalorder %s7790_s16, %s7249_s11  ;;  %s7434_s10 = smov [#allocation9]  }
  0xb4   : > { %s7254_s2 = sshll.u32 %s7434_s10, 4  ;;  %s7255_s2 = int_to_ptr.vmem [resolvable:$false] %s7254_s2 }
  0xb5   : > { %p7252_p0 = pnand %p7250_p6, %p8581_p5  ;;  %s7256_s28 = scalar_lea.vmem %s7255_s2, 1024 }
  0xb6   : > { %p7257_p1 = scmp.lt.s32.totalorder %s7790_s16, %s7255_s2  ;;  %p7258_p11 = scmp.lt.s32.totalorder %s7256_s28, %s7249_s11 }
  0xb7   : > { %p7253_p10 = pneg %p7252_p0 }
  0xb8   : > { %p7259_p4 = por %p7258_p11, %p7257_p1 }
  0xba   : > { %p7260_p3 = pnand %p7259_p4, %p7253_p10 }
  0xbc   : > { %7263 = shalt.err (!%p7260_p3)
}
  0xbd   : > { %6982 = dma.hbm_to_vmem [thread:$0]  (!%p8579_p8), %s7764_s18, 512, %s7790_s16, %s7673_s15, %s8570_s12, %s8570_s12, %s8569_s24  }
  0xbe   : > { %p8582_p13 = scmp.ne.s32.totalorder %s8560_s14, 0 }
  0xbf   : > { %s8583_s5 = sld [smem:[#allocation24_spill]] (!%p8582_p13) }
  0xc0   : > { %301 = sbr.rel (%p8582_p13) target bundleno = 1414 (0x586), region = 40 }
  0xc5   : > { %p8584_p2 = scmp.eq.s32.totalorder (!%p8582_p13), %s8583_s5, 0 }
  0xc7   : > { %7349 = dma.done.wait (%p8584_p2), [#allocation3], 256   ;;  %p8585_p12 = pmov %p8584_p2 }
  0xc8   : > { %p8586_p9 = pmov %p8584_p2 }
  0xc9   : > { %7351 = vsyncadd (%p8585_p12), [#allocation3], 4294967040 }
  0xca   : > { %7353 = dma.done.wait (%p8586_p9), [#allocation6], 256   ;;  %p8587_p7 = pmov %p8584_p2 }
  0xcb   : > { %s8588_s25 = sld [smem:[#allocation19_spill]]  ;;  %s8589_s3 = sld [smem:[#allocation25_spill]] }
  0xcc   : > { %7355 = vsyncadd (%p8587_p7), [#allocation6], 4294967040  ;;  %s311_s29 = sand.u32 1, %s8583_s5  }
  0xcd   : > { %s312_s14 = scalar_lea.sflag [#allocation3], %s311_s29 }
  0xd1   : > { %s313_s15 = sand.u32 1, %s8588_s25   ;;  %p8590_p8 = scmp.ne.s32.totalorder %s8589_s3, 0 }
  0xd2   : > { %s5924_s24 = sshll.u32 %s313_s15, 5 }
  0xd3   : > { %s7831_s12 = scalar_lea.vmem [#allocation7], %s5924_s24 }
  0xd4   : > { %7357 = dma.done.wait (%p8590_p8), %s312_s14, 512  }
  0xd5   : > { %7359 = vsyncadd (%p8590_p8), %s312_s14, 4294966784  ;;  %s8591_s18 = sld [smem:[#allocation26_spill]]  ;;  %s322_s21 = sand.u32 1, %s7390_s22  }
  0xd6   : > { %s5925_s16 = sshll.u32 %s322_s21, 4 }
  0xd7   : > { %s7838_s27 = scalar_lea.vmem [#allocation8], %s5925_s16 }
  0xdb   : > { %p8592_p6 = scmp.ne.s32.totalorder %s8591_s18, 0 }
  0xdd   : > { %7361 = dma.done.wait (%p8592_p6), %s312_s14, 256  }
  0xde   : > { %7363 = vsyncadd (%p8592_p6), %s312_s14, 4294967040  ;;  %s7844_s17 = scalar_lea.vmem [#allocation9], %s5924_s24 }
  0xdf   : > { %7365 = dma.done.wait (%p8590_p8), %s312_s14, 512  }
  0xe0   : > { %7367 = vsyncadd (%p8590_p8), %s312_s14, 4294966784  ;;  %v7851_v0 = vld [vmem:[%s7838_s27] sm:$0xff]  ;;  %s7435_s13 = smov 16   ;;  %v7861_v2 = vld [vmem:[%s7838_s27 + $0x8] sm:$0xff]  ;;  %vm383_vm0 = vcmask 1047680   ;;  %vm426_vm1 = vcmask 130048   ;;  %v373_v44 = vlaneseq }
  0xe1   : > { %v7854_v1 = vld [vmem:[%s7831_s12] sm:$0xff]  ;;  %384 = vrot.lane.b32.xlu0 %v7851_v0, %s7435_s13  ;;  %v7864_v3 = vld [vmem:[%s7831_s12 + $0x8] sm:$0xff]  ;;  %v379_v15 = vld [vmem:[#allocation5] sm:$0xff]  ;;  %s7436_s8 = smov 113   ;;  %s7437_s0 = smov 127   ;;  %v420_v53 = vmul.f32 2.0, %v7851_v0 }
  0xe2   : > { %1453 = vrot.lane.b32.xlu1 %v7854_v1, %s7435_s13  ;;  %v7874_v7 = vld [vmem:[%s7844_s17] sm:$0xff]  ;;  %v7882_v10 = vld [vmem:[%s7844_s17 + $0x8] sm:$0xff]  ;;  %v936_v17 = vsel %vm426_vm1, %v379_v15, 0  ;;  %v7926_v32 = vld [vmem:[%s7831_s12 + $0x10] sm:$0xff]  ;;  %v7962_v47 = vand.u32 127, %v373_v44  ;;  %v421_v58 = vmul.f32 2.0, %v7861_v2 }
  0xe3   : > { %v377_v14 = vld [vmem:[#allocation2] sm:$0xff]  ;;  %v7896_v19 = vand.u32 4294901760, %v936_v17  ;;  %v7934_v34 = vld [vmem:[%s7831_s12 + $0x18] sm:$0xff]  ;;  %v7952_v42 = vld [vmem:[%s7844_s17 + $0x10] sm:$0xff]  ;;  %s8593_s10 = sld [smem:[#allocation21_spill]]  ;;  %s8595_s5 = sld [smem:[#allocation20_spill]] }
  0xe4   : > { %v428_v16 = vsel %vm426_vm1, %v377_v14, 0  ;;  %v7958_v43 = vld [vmem:[%s7844_s17 + $0x18] sm:$0xff]  ;;  %v378_v45 = vld [vmem:[#allocation2 + $0x8] sm:$0xff]  ;;  %vm375_vm2 = vcmp.ge.s32.totalorder %v7962_v47, 1  ;;  %vm376_vm3 = vcmp.le.s32.totalorder %v7962_v47, 14  ;;  %s8594_s28 = sld [smem:[#allocation18_spill]] }
  0xe5   : > { %387 = vrot.lane.b32.xlu0 %v7861_v2, %s7435_s13  ;;  %v7894_v18 = vand.u32 4294901760, %v428_v16  ;;  %v7902_v21 = vsub.f32 %v936_v17, %v7896_v19  ;;  %v380_v46 = vld [vmem:[#allocation5 + $0x8] sm:$0xff]  ;;  %v431_v48 = vsel %vm426_vm1, %v378_v45, 0  ;;  %vm5731_vm4 = vcmp.eq.s32.totalorder %v7962_v47, 0  ;;  %s8596_s14 = sld [smem:[#allocation27_spill]] }
  0xe6   : > { %1456 = vrot.lane.b32.xlu1 %v7864_v3, %s7435_s13  ;;  %v939_v49 = vsel %vm426_vm1, %v380_v46, 0  ;;  %v7967_v50 = vand.u32 4294901760, %v431_v48  ;;  %vm5735_vm5 = vcmp.eq.s32.totalorder %v7962_v47, 1 }
  0xe7   : > { %v7899_v20 = vsub.f32 %v428_v16, %v7894_v18  ;;  %v7910_v25 = vand.u32 4294901760, %v7902_v21  ;;  %v7969_v51 = vand.u32 4294901760, %v939_v49 }
  0xe8   : > { %v7976_v55 = vsub.f32 %v431_v48, %v7967_v50 }
  0xe9   : > { %v7907_v24 = vand.u32 4294901760, %v7899_v20  ;;  %v1011_v27 = vsub.f32 %v7902_v21, %v7910_v25  ;;  %v7979_v56 = vsub.f32 %v939_v49, %v7969_v51  ;;  %s5931_s3 = sshll.u32 %s8593_s10, 1 }
  0xea   : > { %s367_s29 = sand.u32 1, %s8594_s28   ;;  %s5749_s24 = sadd.s32 %s8595_s5, %s5931_s3 }
  0xeb   : > { %v503_v26 = vsub.f32 %v7899_v20, %v7907_v24  ;;  %v7921_v31 = vand.u32 4294901760, %v1011_v27  ;;  %s368_s21 = scalar_lea.vmem [#allocation10], %s367_s29  ;;  %p8598_p0 = scmp.ne.s32.totalorder %s8596_s14, 0 }
  0xec   : > { %s5756_s16 = sshll.u32 %s368_s21, 4  ;;  %s8426_s16 = int_to_ptr.vmem [resolvable:$true] %s5756_s16 }
  0xed   : > { %v7919_v30 = vand.u32 4294901760, %v503_v26  ;;  %6224 = vmatprep.mubr.f32.mxu1 %v7921_v31 }
  0xef   : > { %6182 = vmatprep.mubr.f32.mxu0 %v7919_v30 }
 0x153   : > { %v385_v4 = vpop.permute.xlu0 %384 }
 0x154   : > { %v386_v5 = vsel %vm383_vm0, %v385_v4, %v7851_v0  ;;  %v1454_v6 = vpop.permute.xlu1 %1453 }
 0x155   : > { %390 = vrot.lane.b32.xlu0 %v386_v5, %s7435_s13  ;;  %v1455_v11 = vsel %vm383_vm0, %v1454_v6, %v7854_v1  ;;  %v7987_v5 = vand.u32 4294901760, %v7976_v55  ;;  %v7990_v6 = vand.u32 4294901760, %v7979_v56 }
 0x157   : > { %v388_v8 = vpop.permute.xlu0 %387  ;;  %v513_v26 = vsub.f32 %v7976_v55, %v7987_v5  ;;  %v1021_v27 = vsub.f32 %v7979_v56, %v7990_v6 }
 0x158   : > { %v389_v9 = vsel %vm383_vm0, %v388_v8, %v7861_v2  ;;  %v1457_v12 = vpop.permute.xlu1 %1456 }
 0x159   : > { %392 = vrot.lane.b32.xlu1 %v389_v9, %s7435_s13  ;;  %2501 = vrot.lane.b32.xlu0 %v7874_v7, %s7435_s13  ;;  %v1458_v13 = vsel %vm383_vm0, %v1457_v12, %v7864_v3  ;;  %v8021_v46 = vand.u32 4294901760, %v513_v26  ;;  %v8023_v48 = vand.u32 4294901760, %v1021_v27  ;;  %v1486_v27 = vmul.f32 2.0, %v7864_v3 }
 0x15d   : > { %2504 = vrot.lane.b32.xlu1 %v7882_v10, %s7435_s13  ;;  %1459 = vrot.lane.b32.xlu0 %v1455_v11, %s7435_s13 }
 0x161   : > { %1461 = vrot.lane.b32.xlu1 %v1458_v13, %s7435_s13 }
 0x1c7   : > { %v391_v22 = vpop.permute.xlu0 %390 }
 0x1c8   : > { %v394_v23 = vsel %vm383_vm0, %v391_v22, %v7851_v0 }
 0x1c9   : > { %400 = vrot.lane.b32.xlu0 %v394_v23, %s7436_s8 }
 0x1cb   : > { %v393_v28 = vpop.permute.xlu1 %392  ;;  %v2502_v33 = vpop.permute.xlu0 %2501 }
 0x1cc   : > { %v395_v29 = vsel %vm383_vm0, %v393_v28, %v7861_v2  ;;  %v2503_v35 = vsel %vm383_vm0, %v2502_v33, %v7874_v7 }
 0x1cd   : > { %402 = vrot.lane.b32.xlu1 %v395_v29, %s7436_s8  ;;  %410 = vrot.lane.b32.xlu0 %v394_v23, %s7437_s0 }
 0x1cf   : > { %v2505_v36 = vpop.permute.xlu1 %2504  ;;  %v1460_v37 = vpop.permute.xlu0 %1459 }
 0x1d0   : > { %v2506_v38 = vsel %vm383_vm0, %v2505_v36, %v7882_v10  ;;  %v1463_v39 = vsel %vm383_vm0, %v1460_v37, %v7854_v1 }
 0x1d1   : > { %412 = vrot.lane.b32.xlu1 %v395_v29, %s7437_s0  ;;  %3595 = vrot.lane.b32.xlu0 %v7926_v32, %s7435_s13 }
 0x1d3   : > { %v1462_v40 = vpop.permute.xlu1 %1461 }
 0x1d4   : > { %v1464_v41 = vsel %vm383_vm0, %v1462_v40, %v7864_v3 }
 0x1d5   : > { %3598 = vrot.lane.b32.xlu1 %v7934_v34, %s7435_s13  ;;  %2507 = vrot.lane.b32.xlu0 %v2503_v35, %s7435_s13 }
 0x1d9   : > { %2509 = vrot.lane.b32.xlu1 %v2506_v38, %s7435_s13  ;;  %1467 = vrot.lane.b32.xlu0 %v1463_v39, %s7436_s8 }
 0x1dd   : > { %1469 = vrot.lane.b32.xlu1 %v1464_v41, %s7436_s8  ;;  %1475 = vrot.lane.b32.xlu0 %v1463_v39, %s7437_s0 }
 0x1e1   : > { %1477 = vrot.lane.b32.xlu1 %v1464_v41, %s7437_s0  ;;  %4643 = vrot.lane.b32.xlu0 %v7952_v42, %s7435_s13 }
 0x1e5   : > { %4646 = vrot.lane.b32.xlu1 %v7958_v43, %s7435_s13 }
 0x23b   : > { %v401_v52 = vpop.permute.xlu0 %400 }
 0x23c   : > { %v406_v54 = vsel %vm375_vm2, %v401_v52, 0.0 }
 0x23d   : > { %v422_v57 = vadd.f32 %v420_v53, %v406_v54 }
 0x23f   : > { %v403_v59 = vpop.permute.xlu1 %402  ;;  %v411_v60 = vpop.permute.xlu0 %410 }
 0x240   : > { %v407_v61 = vsel %vm375_vm2, %v403_v59, 0.0  ;;  %v416_v62 = vsel %vm376_vm3, %v411_v60, 0.0 }
 0x241   : > { %v418_v63 = vsub.f32 %v416_v62, %v406_v54  ;;  %v424_v4 = vadd.f32 %v422_v57, %v416_v62  ;;  %v423_v8 = vadd.f32 %v421_v58, %v407_v61 }
 0x243   : > { %v434_v9 = vand.u32 4294901760, %v418_v63  ;;  %v942_v11 = vand.u32 4294901760, %v424_v4  ;;  %v413_v12 = vpop.permute.xlu1 %412  ;;  %v3596_v13 = vpop.permute.xlu0 %3595 }
 0x244   : > { %v417_v14 = vsel %vm376_vm3, %v413_v12, 0.0  ;;  %v3597_v15 = vsel %vm383_vm0, %v3596_v13, %v7926_v32 }
 0x245   : > { %v7996_v16 = vsub.f32 %v418_v63, %v434_v9  ;;  %v7998_v17 = vsub.f32 %v424_v4, %v942_v11  ;;  %v419_v22 = vsub.f32 %v417_v14, %v407_v61  ;;  %v425_v23 = vadd.f32 %v423_v8, %v417_v14  ;;  %3601 = vrot.lane.b32.xlu0 %v3597_v15, %s7435_s13 }
 0x247   : > { %v523_v28 = vand.u32 4294901760, %v7996_v16  ;;  %v1031_v29 = vand.u32 4294901760, %v7998_v17  ;;  %v437_v33 = vand.u32 4294901760, %v419_v22  ;;  %v945_v35 = vand.u32 4294901760, %v425_v23  ;;  %v3599_v36 = vpop.permute.xlu1 %3598  ;;  %v2508_v37 = vpop.permute.xlu0 %2507 }
 0x248   : > { %v3600_v38 = vsel %vm383_vm0, %v3599_v36, %v7934_v34  ;;  %v2511_v39 = vsel %vm383_vm0, %v2508_v37, %v7874_v7 }
 0x249   : > { %v8011_v40 = vpack.c.bf16 %v437_v33, %v434_v9  ;;  %v8013_v41 = vsub.f32 %v419_v22, %v437_v33  ;;  %v8015_v44 = vpack.c.bf16 %v945_v35, %v942_v11  ;;  %v8017_v45 = vsub.f32 %v425_v23, %v945_v35  ;;  %3603 = vrot.lane.b32.xlu1 %v3600_v38, %s7435_s13 }
 0x24a   : > { %2515 = vrot.lane.b32.xlu0 %v2511_v39, %s7436_s8  ;;  %v524_v54 = vsub.f32 %v7996_v16, %v523_v28  ;;  %v1032_v57 = vsub.f32 %v7998_v17, %v1031_v29  ;;  %v1485_v33 = vmul.f32 2.0, %v7854_v1 }
 0x24b   : > { %v530_v49 = vand.u32 4294901760, %v8013_v41  ;;  %v1038_v52 = vand.u32 4294901760, %v8017_v45  ;;  %v2510_v53 = vpop.permute.xlu1 %2509  ;;  %6599 = vmatprep.subr.bf16.mxu0 %v8011_v40  ;;  %6623 = vmatprep.subr.bf16.mxu1 %v8015_v44  ;;  %v1468_v58 = vpop.permute.xlu0 %1467  ;;  %v6606_v14 = vpack.c.bf16 %v8013_v41, %v7996_v16  ;;  %v6630_v15 = vpack.c.bf16 %v8017_v45, %v7998_v17 }
 0x24c   : > { %6601 = vmatpush3.bf16.msra.mxu0 %v8011_v40  ;;  %6625 = vmatpush3.bf16.msra.mxu1 %v8015_v44  ;;  %v2512_v59 = vsel %vm383_vm0, %v2510_v53, %v7882_v10  ;;  %v525_v62 = vand.u32 4294901760, %v524_v54  ;;  %v1033_v4 = vand.u32 4294901760, %v1032_v57  ;;  %v1473_v37 = vsel %vm375_vm2, %v1468_v58, 0.0 }
 0x24d   : > { %2517 = vrot.lane.b32.xlu1 %v2512_v59, %s7436_s8  ;;  %v531_v60 = vsub.f32 %v8013_v41, %v530_v49  ;;  %v1039_v61 = vsub.f32 %v8017_v45, %v1038_v52  ;;  %v1487_v41 = vadd.f32 %v1485_v33, %v1473_v37  ;;  %v6614_v54 = vpack.c.bf16 %v530_v49, %v523_v28 }
 0x24e   : > { %2523 = vrot.lane.b32.xlu0 %v2511_v39, %s7437_s0  ;;  %v6638_v57 = vpack.c.bf16 %v1038_v52, %v1031_v29 }
 0x24f   : > { %6183 = vmatmul.mubr.f32.vlgmr.msra.gmra.mrb[0].mxu0 %v8021_v46  ;;  %6225 = vmatmul.mubr.f32.vlgmr.msra.gmra.mrb[0].mxu1 %v8023_v48  ;;  %v532_v63 = vand.u32 4294901760, %v531_v60  ;;  %v1040_v8 = vand.u32 4294901760, %v1039_v61  ;;  %v1470_v9 = vpop.permute.xlu1 %1469  ;;  %v1476_v11 = vpop.permute.xlu0 %1475 }
 0x250   : > { %6189 = vmatprep.mubr.f32.mxu0 %v7894_v18  ;;  %6231 = vmatprep.mubr.f32.mxu1 %v7896_v19  ;;  %v1474_v36 = vsel %vm375_vm2, %v1470_v9, 0.0  ;;  %v1481_v45 = vsel %vm376_vm3, %v1476_v11, 0.0 }
 0x251   : > { %2525 = vrot.lane.b32.xlu1 %v2512_v59, %s7437_s0  ;;  %v6602_v12 = vpack.c.bf16 %v532_v63, %v525_v62  ;;  %v6626_v13 = vpack.c.bf16 %v1040_v8, %v1033_v4  ;;  %v1488_v39 = vadd.f32 %v1486_v27, %v1474_v36  ;;  %v1483_v58 = vsub.f32 %v1481_v45, %v1473_v37 }
 0x252   : > { %v1489_v61 = vadd.f32 %v1487_v41, %v1481_v45 }
 0x253   : > { %6603 = vmatprep.subr.bf16.mxu0 %v6602_v12  ;;  %6627 = vmatprep.subr.bf16.mxu1 %v6626_v13  ;;  %v1478_v22 = vpop.permute.xlu1 %1477  ;;  %v4644_v23 = vpop.permute.xlu0 %4643  ;;  %v1492_v62 = vand.u32 4294901760, %v1483_v58 }
 0x254   : > { %6605 = vmatpush3.bf16.msra.mxu0 %v6602_v12  ;;  %6629 = vmatpush3.bf16.msra.mxu1 %v6626_v13  ;;  %v4645_v26 = vsel %vm383_vm0, %v4644_v23, %v7952_v42  ;;  %v1482_v53 = vsel %vm376_vm3, %v1478_v22, 0.0  ;;  %v1994_v28 = vand.u32 4294901760, %v1489_v61 }
 0x255   : > { %6607 = vmatprep.subr.bf16.mxu0 %v6606_v14  ;;  %6631 = vmatprep.subr.bf16.mxu1 %v6630_v15  ;;  %v1484_v59 = vsub.f32 %v1482_v53, %v1474_v36  ;;  %v1490_v60 = vadd.f32 %v1488_v39, %v1482_v53  ;;  %v8084_v29 = vsub.f32 %v1483_v58, %v1492_v62  ;;  %v2533_v53 = vmul.f32 2.0, %v7874_v7 }
 0x256   : > { %4649 = vrot.lane.b32.xlu0 %v4645_v26, %s7435_s13  ;;  %v8090_v63 = vsub.f32 %v1489_v61, %v1994_v28 }
 0x257   : > { %6190 = vmatmul.mubr.f32.vlgmr.msra.gmra.mrb[0].mxu0 %v7967_v50  ;;  %6232 = vmatmul.mubr.f32.vlgmr.msra.gmra.mrb[0].mxu1 %v7969_v51  ;;  %v4647_v35 = vpop.permute.xlu1 %4646  ;;  %v1495_v16 = vand.u32 4294901760, %v1484_v59  ;;  %v1997_v17 = vand.u32 4294901760, %v1490_v60  ;;  %v1581_v4 = vand.u32 4294901760, %v8084_v29 }
 0x258   : > { %6609 = vmatpush3.bf16.msra.mxu0 %v6606_v14  ;;  %6633 = vmatpush3.bf16.msra.mxu1 %v6630_v15  ;;  %v4648_v38 = vsel %vm383_vm0, %v4647_v35, %v7958_v43  ;;  %v2083_v11 = vand.u32 4294901760, %v8090_v63 }
 0x259   : > { %6611 = vmatprep.subr.bf16.mxu0 %v8011_v40  ;;  %6635 = vmatprep.subr.bf16.mxu1 %v8015_v44  ;;  %v8086_v49 = vsub.f32 %v1484_v59, %v1495_v16  ;;  %v8088_v52 = vsub.f32 %v1490_v60, %v1997_v17  ;;  %v8102_v12 = vpack.c.bf16 %v1495_v16, %v1492_v62  ;;  %v2534_v59 = vmul.f32 2.0, %v7882_v10 }
 0x25a   : > { %6196 = vmatprep.mubr.f32.mxu0 %v7899_v20  ;;  %6238 = vmatprep.mubr.f32.mxu1 %v7902_v21  ;;  %v8104_v13 = vpack.c.bf16 %v1997_v17, %v1994_v28  ;;  %v1582_v14 = vsub.f32 %v8084_v29, %v1581_v4  ;;  %v2084_v22 = vsub.f32 %v8090_v63, %v2083_v11 }
 0x25b   : > { %4651 = vrot.lane.b32.xlu1 %v4648_v38, %s7435_s13  ;;  %v1588_v8 = vand.u32 4294901760, %v8086_v49  ;;  %v2090_v9 = vand.u32 4294901760, %v8088_v52  ;;  %v6678_v37 = vpack.c.bf16 %v8088_v52, %v8090_v63  ;;  %s8597_s13 = sld [smem:[#allocation34_spill]] }
 0x25c   : > { %v1583_v26 = vand.u32 4294901760, %v1582_v14  ;;  %v2085_v33 = vand.u32 4294901760, %v2084_v22 }
 0x25d   : > { %v1589_v15 = vsub.f32 %v8086_v49, %v1588_v8  ;;  %v2091_v23 = vsub.f32 %v8088_v52, %v2090_v9  ;;  %v6662_v38 = vpack.c.bf16 %v1588_v8, %v1581_v4  ;;  %v6686_v39 = vpack.c.bf16 %v2090_v9, %v2083_v11 }
 0x25f   : > { %6197 = vmatmul.mubr.f32.vlgmr.msra.gmra.mrb[0].mxu0 %v7976_v55  ;;  %6239 = vmatmul.mubr.f32.vlgmr.msra.gmra.mrb[0].mxu1 %v7979_v56  ;;  %v1590_v27 = vand.u32 4294901760, %v1589_v15  ;;  %v2092_v35 = vand.u32 4294901760, %v2091_v23 }
 0x260   : > { %6613 = vmatpush3.bf16.msra.mxu0 %v8011_v40  ;;  %6637 = vmatpush3.bf16.msra.mxu1 %v8015_v44 }
 0x261   : > { %6615 = vmatprep.subr.bf16.mxu0 %v6614_v54  ;;  %6639 = vmatprep.subr.bf16.mxu1 %v6638_v57  ;;  %v6650_v36 = vpack.c.bf16 %v1590_v27, %v1583_v26 }
 0x262   : > { %6203 = vmatprep.mubr.f32.mxu0 %v7907_v24  ;;  %6245 = vmatprep.mubr.f32.mxu1 %v7910_v25 }
 0x267   : > { %6204 = vmatmul.mubr.f32.vlgmr.msra.gmra.mrb[0].mxu0 %v7987_v5  ;;  %6246 = vmatmul.mubr.f32.vlgmr.msra.gmra.mrb[0].mxu1 %v7990_v6 }
 0x268   : > { %6617 = vmatpush3.bf16.msra.mxu0 %v6614_v54  ;;  %6641 = vmatpush3.bf16.msra.mxu1 %v6638_v57 }
 0x269   : > { %6619 = vmatprep.subr.bf16.mxu0 %v8011_v40  ;;  %6643 = vmatprep.subr.bf16.mxu1 %v8015_v44 }
 0x26a   : > { %6210 = vmatprep.mubr.f32.mxu0 %v7894_v18  ;;  %6252 = vmatprep.mubr.f32.mxu1 %v7896_v19 }
 0x26f   : > { %6211 = vmatmul.mubr.f32.vlgmr.msra.gmra.mrb[0].mxu0 %v7967_v50  ;;  %6253 = vmatmul.mubr.f32.vlgmr.msra.gmra.mrb[0].mxu1 %v7969_v51 }
 0x270   : > { %6621 = vmatpush3.bf16.msra.mxu0 %v8011_v40  ;;  %6645 = vmatpush3.bf16.msra.mxu1 %v8015_v44  ;;  %v6674_v40 = vpack.c.bf16 %v2092_v35, %v2085_v33  ;;  %v6654_v44 = vpack.c.bf16 %v8086_v49, %v8084_v29 }
 0x271   : > { %6647 = vmatprep.subr.bf16.mxu0 %v8102_v12  ;;  %6671 = vmatprep.subr.bf16.mxu1 %v8104_v13 }
 0x272   : > { %6217 = vmatprep.mubr.f32.mxu0 %v7894_v18  ;;  %6259 = vmatprep.mubr.f32.mxu1 %v7896_v19 }
 0x277   : > { %6218 = vmatmul.mubr.f32.vlgmr.msra.gmra.mrb[0].mxu0 %v7967_v50  ;;  %6260 = vmatmul.mubr.f32.vlgmr.msra.gmra.mrb[0].mxu1 %v7969_v51 }
 0x278   : > { %6649 = vmatpush3.bf16.msra.mxu0 %v8102_v12  ;;  %6673 = vmatpush3.bf16.msra.mxu1 %v8104_v13 }
 0x279   : > { %6651 = vmatprep.subr.bf16.mxu0 %v6650_v36  ;;  %6675 = vmatprep.subr.bf16.mxu1 %v6674_v40 }
 0x27a   : > { %6266 = vmatprep.mubr.f32.mxu0 %v7919_v30  ;;  %6308 = vmatprep.mubr.f32.mxu1 %v7921_v31 }
 0x27b   : > { %6267 = vmatmul.mubr.f32.vlgmr.msra.gmra.mrb[2].mxu0 %v8021_v46  ;;  %6309 = vmatmul.mubr.f32.vlgmr.msra.gmra.mrb[2].mxu1 %v8023_v48 }
 0x27c   : > { %6653 = vmatpush3.bf16.msra.mxu0 %v6650_v36  ;;  %6677 = vmatpush3.bf16.msra.mxu1 %v6674_v40 }
 0x27d   : > { %6655 = vmatprep.subr.bf16.mxu0 %v6654_v44  ;;  %6679 = vmatprep.subr.bf16.mxu1 %v6678_v37 }
 0x27e   : > { %6273 = vmatprep.mubr.f32.mxu0 %v7894_v18  ;;  %6315 = vmatprep.mubr.f32.mxu1 %v7896_v19 }
 0x283   : > { %6274 = vmatmul.mubr.f32.vlgmr.msra.gmra.mrb[2].mxu0 %v7967_v50  ;;  %6316 = vmatmul.mubr.f32.vlgmr.msra.gmra.mrb[2].mxu1 %v7969_v51 }
 0x284   : > { %6657 = vmatpush3.bf16.msra.mxu0 %v6654_v44  ;;  %6681 = vmatpush3.bf16.msra.mxu1 %v6678_v37 }
 0x285   : > { %6659 = vmatprep.subr.bf16.mxu0 %v8102_v12  ;;  %6683 = vmatprep.subr.bf16.mxu1 %v8104_v13 }
 0x286   : > { %6280 = vmatprep.mubr.f32.mxu0 %v7899_v20  ;;  %6322 = vmatprep.mubr.f32.mxu1 %v7902_v21 }
 0x28b   : > { %6281 = vmatmul.mubr.f32.vlgmr.msra.gmra.mrb[2].mxu0 %v7976_v55  ;;  %6323 = vmatmul.mubr.f32.vlgmr.msra.gmra.mrb[2].mxu1 %v7979_v56 }
 0x28c   : > { %6661 = vmatpush3.bf16.msra.mxu0 %v8102_v12  ;;  %6685 = vmatpush3.bf16.msra.mxu1 %v8104_v13 }
 0x28d   : > { %6663 = vmatprep.subr.bf16.mxu0 %v6662_v38  ;;  %6687 = vmatprep.subr.bf16.mxu1 %v6686_v39 }
 0x28e   : > { %6287 = vmatprep.mubr.f32.mxu0 %v7907_v24  ;;  %6329 = vmatprep.mubr.f32.mxu1 %v7910_v25 }
 0x293   : > { %6288 = vmatmul.mubr.f32.vlgmr.msra.gmra.mrb[2].mxu0 %v7987_v5  ;;  %6330 = vmatmul.mubr.f32.vlgmr.msra.gmra.mrb[2].mxu1 %v7990_v6 }
 0x294   : > { %6665 = vmatpush3.bf16.msra.mxu0 %v6662_v38  ;;  %6689 = vmatpush3.bf16.msra.mxu1 %v6686_v39 }
 0x295   : > { %6667 = vmatprep.subr.bf16.mxu0 %v8102_v12  ;;  %6691 = vmatprep.subr.bf16.mxu1 %v8104_v13 }
 0x296   : > { %6294 = vmatprep.mubr.f32.mxu0 %v7894_v18  ;;  %6336 = vmatprep.mubr.f32.mxu1 %v7896_v19 }
 0x29b   : > { %6295 = vmatmul.mubr.f32.vlgmr.msra.gmra.mrb[2].mxu0 %v7967_v50  ;;  %6337 = vmatmul.mubr.f32.vlgmr.msra.gmra.mrb[2].mxu1 %v7969_v51 }
 0x29c   : > { %6669 = vmatpush3.bf16.msra.mxu0 %v8102_v12  ;;  %6693 = vmatpush3.bf16.msra.mxu1 %v8104_v13 }
 0x29d   : > { %6301 = vmatprep.mubr.f32.mxu0 %v7894_v18  ;;  %6343 = vmatprep.mubr.f32.mxu1 %v7896_v19 }
 0x2a3   : > { %6302 = vmatmul.mubr.f32.vlgmr.msra.gmra.mrb[2].mxu0 %v7967_v50  ;;  %6344 = vmatmul.mubr.f32.vlgmr.msra.gmra.mrb[2].mxu1 %v7969_v51 }
 0x2a4   : > { %6350 = vmatprep.mubr.f32.mxu0 %v7919_v30  ;;  %6392 = vmatprep.mubr.f32.mxu1 %v7921_v31 }
 0x2b7   : > { %v3602_v41 = vpop.permute.xlu0 %3601 }
 0x2b8   : > { %v3605_v45 = vsel %vm383_vm0, %v3602_v41, %v7926_v32 }
 0x2b9   : > { %3609 = vrot.lane.b32.xlu0 %v3605_v45, %s7436_s8 }
 0x2bb   : > { %v3604_v54 = vpop.permute.xlu1 %3603 }
 0x2bc   : > { %v3606_v57 = vsel %vm383_vm0, %v3604_v54, %v7934_v34  ;;  %v2516_v58 = vpop.permute.xlu0 %2515 }
 0x2bd   : > { %3611 = vrot.lane.b32.xlu1 %v3606_v57, %s7436_s8  ;;  %3617 = vrot.lane.b32.xlu0 %v3605_v45, %s7437_s0  ;;  %v2521_v60 = vsel %vm375_vm2, %v2516_v58, 0.0 }
 0x2be   : > { %v2535_v61 = vadd.f32 %v2533_v53, %v2521_v60 }
 0x2bf   : > { %v2518_v62 = vpop.permute.xlu1 %2517 }
 0x2c0   : > { %v2522_v16 = vsel %vm375_vm2, %v2518_v62, 0.0  ;;  %v2524_v17 = vpop.permute.xlu0 %2523 }
 0x2c1   : > { %v2536_v28 = vadd.f32 %v2534_v59, %v2522_v16  ;;  %3619 = vrot.lane.b32.xlu1 %v3606_v57, %s7437_s0  ;;  %v2529_v29 = vsel %vm376_vm3, %v2524_v17, 0.0 }
 0x2c2   : > { %v2531_v49 = vsub.f32 %v2529_v29, %v2521_v60  ;;  %v2537_v52 = vadd.f32 %v2535_v61, %v2529_v29 }
 0x2c3   : > { %v2526_v63 = vpop.permute.xlu1 %2525 }
 0x2c4   : > { %v2530_v4 = vsel %vm376_vm3, %v2526_v63, 0.0  ;;  %v2540_v8 = vand.u32 4294901760, %v2531_v49  ;;  %v3042_v9 = vand.u32 4294901760, %v2537_v52 }
 0x2c5   : > { %v2532_v11 = vsub.f32 %v2530_v4, %v2522_v16  ;;  %v2538_v12 = vadd.f32 %v2536_v28, %v2530_v4 }
 0x2c6   : > { %v2628_v13 = vsub.f32 %v2531_v49, %v2540_v8  ;;  %v3130_v14 = vsub.f32 %v2537_v52, %v3042_v9  ;;  %v3627_v52 = vmul.f32 2.0, %v7926_v32 }
 0x2c7   : > { %v2543_v15 = vand.u32 4294901760, %v2532_v11  ;;  %v3045_v22 = vand.u32 4294901760, %v2538_v12 }
 0x2c8   : > { %v2629_v23 = vand.u32 4294901760, %v2628_v13  ;;  %v3131_v26 = vand.u32 4294901760, %v3130_v14  ;;  %v4650_v27 = vpop.permute.xlu0 %4649 }
 0x2c9   : > { %v2635_v33 = vsub.f32 %v2532_v11, %v2543_v15  ;;  %v3137_v35 = vsub.f32 %v2538_v12, %v3045_v22  ;;  %v8178_v36 = vpack.c.bf16 %v2543_v15, %v2540_v8  ;;  %v8180_v40 = vpack.c.bf16 %v3045_v22, %v3042_v9 }
 0x2ca   : > { %v2630_v44 = vsub.f32 %v2628_v13, %v2629_v23  ;;  %v3132_v37 = vsub.f32 %v3130_v14, %v3131_v26  ;;  %v4653_v38 = vsel %vm383_vm0, %v4650_v27, %v7952_v42  ;;  %v3628_v9 = vmul.f32 2.0, %v7934_v34 }
 0x2cb   : > { %v2636_v39 = vand.u32 4294901760, %v2635_v33  ;;  %v3138_v41 = vand.u32 4294901760, %v3137_v35  ;;  %6695 = vmatprep.subr.bf16.mxu0 %v8178_v36  ;;  %6719 = vmatprep.subr.bf16.mxu1 %v8180_v40  ;;  %v6702_v62 = vpack.c.bf16 %v2635_v33, %v2628_v13  ;;  %v6726_v28 = vpack.c.bf16 %v3137_v35, %v3130_v14 }
 0x2cc   : > { %6697 = vmatpush3.bf16.msra.mxu0 %v8178_v36  ;;  %6721 = vmatpush3.bf16.msra.mxu1 %v8180_v40  ;;  %v2631_v45 = vand.u32 4294901760, %v2630_v44  ;;  %v3133_v54 = vand.u32 4294901760, %v3132_v37 }
 0x2cd   : > { %v2637_v53 = vsub.f32 %v2635_v33, %v2636_v39  ;;  %v3139_v57 = vsub.f32 %v3137_v35, %v3138_v41  ;;  %v4652_v58 = vpop.permute.xlu1 %4651  ;;  %4657 = vrot.lane.b32.xlu0 %v4653_v38, %s7436_s8  ;;  %v6710_v29 = vpack.c.bf16 %v2636_v39, %v2629_v23  ;;  %v6734_v49 = vpack.c.bf16 %v3138_v41, %v3131_v26 }
 0x2ce   : > { %v4654_v59 = vsel %vm383_vm0, %v4652_v58, %v7958_v43 }
 0x2cf   : > { %6351 = vmatmul.mubr.f32.vlgmr.msra.gmra.mrb[4].mxu0 %v8021_v46  ;;  %6393 = vmatmul.mubr.f32.vlgmr.msra.gmra.mrb[4].mxu1 %v8023_v48  ;;  %v2638_v60 = vand.u32 4294901760, %v2637_v53  ;;  %v3140_v61 = vand.u32 4294901760, %v3139_v57 }
 0x2d0   : > { %6357 = vmatprep.mubr.f32.mxu0 %v7894_v18  ;;  %6399 = vmatprep.mubr.f32.mxu1 %v7896_v19 }
 0x2d1   : > { %v6698_v16 = vpack.c.bf16 %v2638_v60, %v2631_v45  ;;  %v6722_v17 = vpack.c.bf16 %v3140_v61, %v3133_v54  ;;  %4659 = vrot.lane.b32.xlu1 %v4654_v59, %s7436_s8  ;;  %4665 = vrot.lane.b32.xlu0 %v4653_v38, %s7437_s0 }
 0x2d3   : > { %6699 = vmatprep.subr.bf16.mxu0 %v6698_v16  ;;  %6723 = vmatprep.subr.bf16.mxu1 %v6722_v17 }
 0x2d4   : > { %6701 = vmatpush3.bf16.msra.mxu0 %v6698_v16  ;;  %6725 = vmatpush3.bf16.msra.mxu1 %v6722_v17 }
 0x2d5   : > { %6703 = vmatprep.subr.bf16.mxu0 %v6702_v62  ;;  %6727 = vmatprep.subr.bf16.mxu1 %v6726_v28 }
 0x2d6   : > { %4667 = vrot.lane.b32.xlu1 %v4654_v59, %s7437_s0  ;;  %s5742_s0 = scalar_lea.sflag [#allocation4], %s367_s29 }
 0x2d7   : > { %6358 = vmatmul.mubr.f32.vlgmr.msra.gmra.mrb[4].mxu0 %v7967_v50  ;;  %6400 = vmatmul.mubr.f32.vlgmr.msra.gmra.mrb[4].mxu1 %v7969_v51 }
 0x2d8   : > { %6705 = vmatpush3.bf16.msra.mxu0 %v6702_v62  ;;  %6729 = vmatpush3.bf16.msra.mxu1 %v6726_v28 }
 0x2d9   : > { %6364 = vmatprep.mubr.f32.mxu0 %v7899_v20  ;;  %6406 = vmatprep.mubr.f32.mxu1 %v7902_v21 }
 0x2da   : > { %6707 = vmatprep.subr.bf16.mxu0 %v8178_v36  ;;  %6731 = vmatprep.subr.bf16.mxu1 %v8180_v40 }
 0x2df   : > { %6365 = vmatmul.mubr.f32.vlgmr.msra.gmra.mrb[4].mxu0 %v7976_v55  ;;  %6407 = vmatmul.mubr.f32.vlgmr.msra.gmra.mrb[4].mxu1 %v7979_v56 }
 0x2e0   : > { %6709 = vmatpush3.bf16.msra.mxu0 %v8178_v36  ;;  %6733 = vmatpush3.bf16.msra.mxu1 %v8180_v40 }
 0x2e1   : > { %6711 = vmatprep.subr.bf16.mxu0 %v6710_v29  ;;  %6735 = vmatprep.subr.bf16.mxu1 %v6734_v49 }
 0x2e2   : > { %6371 = vmatprep.mubr.f32.mxu0 %v7907_v24  ;;  %6413 = vmatprep.mubr.f32.mxu1 %v7910_v25 }
 0x2e7   : > { %6372 = vmatmul.mubr.f32.vlgmr.msra.gmra.mrb[4].mxu0 %v7987_v5  ;;  %6414 = vmatmul.mubr.f32.vlgmr.msra.gmra.mrb[4].mxu1 %v7990_v6 }
 0x2e8   : > { %6713 = vmatpush3.bf16.msra.mxu0 %v6710_v29  ;;  %6737 = vmatpush3.bf16.msra.mxu1 %v6734_v49 }
 0x2e9   : > { %6715 = vmatprep.subr.bf16.mxu0 %v8178_v36  ;;  %6739 = vmatprep.subr.bf16.mxu1 %v8180_v40 }
 0x2ea   : > { %6378 = vmatprep.mubr.f32.mxu0 %v7894_v18  ;;  %6420 = vmatprep.mubr.f32.mxu1 %v7896_v19 }
 0x2ef   : > { %6379 = vmatmul.mubr.f32.vlgmr.msra.gmra.mrb[4].mxu0 %v7967_v50  ;;  %6421 = vmatmul.mubr.f32.vlgmr.msra.gmra.mrb[4].mxu1 %v7969_v51 }
 0x2f0   : > { %6717 = vmatpush3.bf16.msra.mxu0 %v8178_v36  ;;  %6741 = vmatpush3.bf16.msra.mxu1 %v8180_v40 }
 0x2f1   : > { %6385 = vmatprep.mubr.f32.mxu0 %v7894_v18  ;;  %6427 = vmatprep.mubr.f32.mxu1 %v7896_v19 }
 0x2f7   : > { %6386 = vmatmul.mubr.f32.vlgmr.msra.gmra.mrb[4].mxu0 %v7967_v50  ;;  %6428 = vmatmul.mubr.f32.vlgmr.msra.gmra.mrb[4].mxu1 %v7969_v51 }
 0x2f8   : > { %6434 = vmatprep.mubr.f32.mxu0 %v7919_v30  ;;  %6476 = vmatprep.mubr.f32.mxu1 %v7921_v31 }
 0x32b   : > { %v3610_v63 = vpop.permute.xlu0 %3609 }
 0x32c   : > { %v3615_v4 = vsel %vm375_vm2, %v3610_v63, 0.0 }
 0x32d   : > { %v3629_v8 = vadd.f32 %v3627_v52, %v3615_v4 }
 0x32f   : > { %v3612_v11 = vpop.permute.xlu1 %3611  ;;  %v3618_v12 = vpop.permute.xlu0 %3617 }
 0x330   : > { %v3616_v13 = vsel %vm375_vm2, %v3612_v11, 0.0  ;;  %v3623_v14 = vsel %vm376_vm3, %v3618_v12, 0.0  ;;  %v4675_v11 = vmul.f32 2.0, %v7952_v42  ;;  %v4676_v12 = vmul.f32 2.0, %v7958_v43 }
 0x331   : > { %v3625_v15 = vsub.f32 %v3623_v14, %v3615_v4  ;;  %v3631_v22 = vadd.f32 %v3629_v8, %v3623_v14  ;;  %v3630_v23 = vadd.f32 %v3628_v9, %v3616_v13 }
 0x333   : > { %v3634_v26 = vand.u32 4294901760, %v3625_v15  ;;  %v4136_v32 = vand.u32 4294901760, %v3631_v22  ;;  %v3620_v27 = vpop.permute.xlu1 %3619 }
 0x334   : > { %v3624_v33 = vsel %vm376_vm3, %v3620_v27, 0.0 }
 0x335   : > { %v8236_v35 = vsub.f32 %v3625_v15, %v3634_v26  ;;  %v8238_v34 = vsub.f32 %v3631_v22, %v4136_v32  ;;  %v3626_v36 = vsub.f32 %v3624_v33, %v3616_v13  ;;  %v3632_v40 = vadd.f32 %v3630_v23, %v3624_v33 }
 0x337   : > { %v3723_v44 = vand.u32 4294901760, %v8236_v35  ;;  %v4225_v37 = vand.u32 4294901760, %v8238_v34  ;;  %v3637_v38 = vand.u32 4294901760, %v3626_v36  ;;  %v4139_v39 = vand.u32 4294901760, %v3632_v40 }
 0x339   : > { %v8242_v41 = vpack.c.bf16 %v3637_v38, %v3634_v26  ;;  %v8244_v45 = vsub.f32 %v3626_v36, %v3637_v38  ;;  %v8246_v53 = vpack.c.bf16 %v4139_v39, %v4136_v32  ;;  %v8248_v54 = vsub.f32 %v3632_v40, %v4139_v39 }
 0x33a   : > { %v3724_v59 = vsub.f32 %v8236_v35, %v3723_v44  ;;  %v4226_v60 = vsub.f32 %v8238_v34, %v4225_v37 }
 0x33b   : > { %v3730_v57 = vand.u32 4294901760, %v8244_v45  ;;  %v4232_v58 = vand.u32 4294901760, %v8248_v54  ;;  %6743 = vmatprep.subr.bf16.mxu0 %v8242_v41  ;;  %6767 = vmatprep.subr.bf16.mxu1 %v8246_v53  ;;  %v6750_v4 = vpack.c.bf16 %v8244_v45, %v8236_v35  ;;  %v6774_v8 = vpack.c.bf16 %v8248_v54, %v8238_v34 }
 0x33c   : > { %6745 = vmatpush3.bf16.msra.mxu0 %v8242_v41  ;;  %6769 = vmatpush3.bf16.msra.mxu1 %v8246_v53  ;;  %v3725_v16 = vand.u32 4294901760, %v3724_v59  ;;  %v4227_v28 = vand.u32 4294901760, %v4226_v60  ;;  %v3550_v35 = vmax.f32 %v7864_v3, %v7861_v2 }
 0x33d   : > { %v3731_v61 = vsub.f32 %v8244_v45, %v3730_v57  ;;  %v4233_v62 = vsub.f32 %v8248_v54, %v4232_v58 }
 0x33f   : > { %6435 = vmatmul.mubr.f32.vlgmr.msra.gmra.mrb[6].mxu0 %v8021_v46  ;;  %6477 = vmatmul.mubr.f32.vlgmr.msra.gmra.mrb[6].mxu1 %v8023_v48  ;;  %v3732_v17 = vand.u32 4294901760, %v3731_v61  ;;  %v4234_v29 = vand.u32 4294901760, %v4233_v62  ;;  %v4658_v49 = vpop.permute.xlu0 %4657  ;;  %v6758_v62 = vpack.c.bf16 %v3730_v57, %v3723_v44 }
 0x340   : > { %6441 = vmatprep.mubr.f32.mxu0 %v7894_v18  ;;  %6483 = vmatprep.mubr.f32.mxu1 %v7896_v19  ;;  %v4663_v13 = vsel %vm375_vm2, %v4658_v49, 0.0 }
 0x341   : > { %v6746_v52 = vpack.c.bf16 %v3732_v17, %v3725_v16  ;;  %v6770_v63 = vpack.c.bf16 %v4234_v29, %v4227_v28  ;;  %v4677_v22 = vadd.f32 %v4675_v11, %v4663_v13  ;;  %v6782_v16 = vpack.c.bf16 %v4232_v58, %v4225_v37 }
 0x342   : > { %v3549_v28 = vmax.f32 %v7854_v1, %v7851_v0  ;;  %v3552_v0 = vsub.f32 %v7882_v10, %v3550_v35  ;;  %v7112_v35 = vld [vmem:[%s7838_s27] sm:$0xff] }
 0x343   : > { %6747 = vmatprep.subr.bf16.mxu0 %v6746_v52  ;;  %6771 = vmatprep.subr.bf16.mxu1 %v6770_v63  ;;  %v4660_v9 = vpop.permute.xlu1 %4659  ;;  %v4666_v15 = vpop.permute.xlu0 %4665 }
 0x344   : > { %6749 = vmatpush3.bf16.msra.mxu0 %v6746_v52  ;;  %6773 = vmatpush3.bf16.msra.mxu1 %v6770_v63  ;;  %v4664_v14 = vsel %vm375_vm2, %v4660_v9, 0.0  ;;  %v4671_v26 = vsel %vm376_vm3, %v4666_v15, 0.0  ;;  %v3551_v34 = vsub.f32 %v7874_v7, %v3549_v28 }
 0x345   : > { %6751 = vmatprep.subr.bf16.mxu0 %v6750_v4  ;;  %6775 = vmatprep.subr.bf16.mxu1 %v6774_v8  ;;  %v4678_v42 = vadd.f32 %v4676_v12, %v4664_v14  ;;  %v4673_v38 = vsub.f32 %v4671_v26, %v4663_v13  ;;  %v4679_v39 = vadd.f32 %v4677_v22, %v4671_v26 }
 0x346   : > { %v3553_v1 = vand.u32 2147483647, %v3551_v34  ;;  %v7113_v34 = vld [vmem:[%s7831_s12 + $0x10] sm:$0xff] }
 0x347   : > { %6442 = vmatmul.mubr.f32.vlgmr.msra.gmra.mrb[6].mxu0 %v7967_v50  ;;  %6484 = vmatmul.mubr.f32.vlgmr.msra.gmra.mrb[6].mxu1 %v7969_v51  ;;  %v4682_v49 = vand.u32 4294901760, %v4673_v38  ;;  %v5184_v52 = vand.u32 4294901760, %v4679_v39 }
 0x348   : > { %6753 = vmatpush3.bf16.msra.mxu0 %v6750_v4  ;;  %6777 = vmatpush3.bf16.msra.mxu1 %v6774_v8  ;;  %v4668_v23 = vpop.permute.xlu1 %4667  ;;  %v3554_v8 = vand.u32 2147483647, %v3552_v0  ;;  %v3555_v2 = vsel %vm426_vm1, %v3553_v1, 0.0  ;;  %v5691_v0 = vmax.f32 %v7113_v34, %v7112_v35  ;;  %v7114_v1 = vld [vmem:[%s7838_s27 + $0x8] sm:$0xff] }
 0x349   : > { %6755 = vmatprep.subr.bf16.mxu0 %v8242_v41  ;;  %6779 = vmatprep.subr.bf16.mxu1 %v8246_v53  ;;  %v4672_v43 = vsel %vm376_vm3, %v4668_v23, 0.0  ;;  %v8308_v44 = vsub.f32 %v4673_v38, %v4682_v49  ;;  %v8310_v37 = vsub.f32 %v4679_v39, %v5184_v52 }
 0x34a   : > { %6448 = vmatprep.mubr.f32.mxu0 %v7899_v20  ;;  %6490 = vmatprep.mubr.f32.mxu1 %v7902_v21  ;;  %v6219_v32 = vpop.f32.mrb[0].mxu0  ;;  %v6261_v27 = vpop.f32.mrb[0].mxu1  ;;  %v4674_v40 = vsub.f32 %v4672_v43, %v4664_v14  ;;  %v4680_v59 = vadd.f32 %v4678_v42, %v4672_v43  ;;  %v3556_v3 = vsel %vm426_vm1, %v3554_v8, 0.0  ;;  %v7117_v8 = vld [vmem:[%s7844_s17 + $0x18] sm:$0xff] }
 0x34b   : > { %v1444_v33 = vand.u32 2147483647, %v6219_v32  ;;  %v1446_v36 = vand.u32 2147483647, %v6261_v27  ;;  %v925_v45 = vpop.f32.mrb[1].mxu0  ;;  %v1433_v54 = vpop.f32.mrb[1].mxu1  ;;  %v3557_v9 = vadd.f32 %v3556_v3, %v3555_v2 }
 0x34c   : > { %v1443_v61 = vand.u32 2147483647, %v925_v45  ;;  %v1445_v17 = vand.u32 2147483647, %v1433_v54  ;;  %v4685_v29 = vand.u32 4294901760, %v4674_v40  ;;  %v5187_v63 = vand.u32 4294901760, %v4680_v59 }
 0x34d   : > { %v8288_v60 = vadd.f32 %v1446_v36, %v1444_v33  ;;  %v4771_v7 = vand.u32 4294901760, %v8308_v44  ;;  %v5273_v10 = vand.u32 4294901760, %v8310_v37  ;;  %3558 = vadd.xlane.f32.xlu0 %v3557_v9 }
 0x34e   : > { %v8300_v4 = vadd.f32 %v1445_v17, %v1443_v61  ;;  %v8312_v57 = vsub.f32 %v4674_v40, %v4685_v29  ;;  %v8314_v58 = vsub.f32 %v4680_v59, %v5187_v63  ;;  %v8334_v15 = vpack.c.bf16 %v4685_v29, %v4682_v49 }
 0x34f   : > { %6449 = vmatmul.mubr.f32.vlgmr.msra.gmra.mrb[6].mxu0 %v7976_v55  ;;  %6491 = vmatmul.mubr.f32.vlgmr.msra.gmra.mrb[6].mxu1 %v7979_v56  ;;  %v4772_v13 = vsub.f32 %v8308_v44, %v4771_v7  ;;  %v5274_v14 = vsub.f32 %v8310_v37, %v5273_v10  ;;  %v8336_v22 = vpack.c.bf16 %v5187_v63, %v5184_v52 }
 0x350   : > { %6757 = vmatpush3.bf16.msra.mxu0 %v8242_v41  ;;  %6781 = vmatpush3.bf16.msra.mxu1 %v8246_v53  ;;  %v4778_v11 = vand.u32 4294901760, %v8312_v57  ;;  %v5280_v12 = vand.u32 4294901760, %v8314_v58 }
 0x351   : > { %6759 = vmatprep.subr.bf16.mxu0 %v6758_v62  ;;  %6783 = vmatprep.subr.bf16.mxu1 %v6782_v16  ;;  %v4773_v43 = vand.u32 4294901760, %v4772_v13  ;;  %v5275_v32 = vand.u32 4294901760, %v5274_v14 }
 0x352   : > { %6455 = vmatprep.mubr.f32.mxu0 %v7907_v24  ;;  %6497 = vmatprep.mubr.f32.mxu1 %v7910_v25  ;;  %v4779_v23 = vsub.f32 %v8312_v57, %v4778_v11  ;;  %v5281_v42 = vsub.f32 %v8314_v58, %v5280_v12 }
 0x354   : > { %v4780_v26 = vand.u32 4294901760, %v4779_v23  ;;  %v5282_v27 = vand.u32 4294901760, %v5281_v42 }
 0x356   : > { %v6794_v33 = vpack.c.bf16 %v4780_v26, %v4773_v43  ;;  %v6818_v36 = vpack.c.bf16 %v5282_v27, %v5275_v32 }
 0x357   : > { %6456 = vmatmul.mubr.f32.vlgmr.msra.gmra.mrb[6].mxu0 %v7987_v5  ;;  %6498 = vmatmul.mubr.f32.vlgmr.msra.gmra.mrb[6].mxu1 %v7990_v6 }
 0x358   : > { %6761 = vmatpush3.bf16.msra.mxu0 %v6758_v62  ;;  %6785 = vmatpush3.bf16.msra.mxu1 %v6782_v16 }
 0x359   : > { %6763 = vmatprep.subr.bf16.mxu0 %v8242_v41  ;;  %6787 = vmatprep.subr.bf16.mxu1 %v8246_v53 }
 0x35a   : > { %6462 = vmatprep.mubr.f32.mxu0 %v7894_v18  ;;  %6504 = vmatprep.mubr.f32.mxu1 %v7896_v19 }
 0x35f   : > { %6463 = vmatmul.mubr.f32.vlgmr.msra.gmra.mrb[6].mxu0 %v7967_v50  ;;  %6505 = vmatmul.mubr.f32.vlgmr.msra.gmra.mrb[6].mxu1 %v7969_v51 }
 0x360   : > { %6765 = vmatpush3.bf16.msra.mxu0 %v8242_v41  ;;  %6789 = vmatpush3.bf16.msra.mxu1 %v8246_v53  ;;  %v6798_v41 = vpack.c.bf16 %v8312_v57, %v8308_v44  ;;  %v6822_v53 = vpack.c.bf16 %v8314_v58, %v8310_v37  ;;  %v7115_v44 = vld [vmem:[%s7831_s12 + $0x18] sm:$0xff]  ;;  %v7116_v57 = vld [vmem:[%s7844_s17 + $0x10] sm:$0xff]  ;;  %s5932_s12 = sshll.u32 %s5749_s24, 4 }
 0x361   : > { %6791 = vmatprep.subr.bf16.mxu0 %v8334_v15  ;;  %6815 = vmatprep.subr.bf16.mxu1 %v8336_v22  ;;  %v5692_v37 = vmax.f32 %v7115_v44, %v7114_v1  ;;  %v5693_v58 = vsub.f32 %v7116_v57, %v5691_v0  ;;  %s8424_s8 = scalar_lea.hbm %s8597_s13, %s5932_s12 }
 0x362   : > { %6469 = vmatprep.mubr.f32.mxu0 %v7894_v18  ;;  %6511 = vmatprep.mubr.f32.mxu1 %v7896_v19 }
 0x363   : > { %v5694_v2 = vsub.f32 %v7117_v8, %v5692_v37  ;;  %v5695_v3 = vand.u32 2147483647, %v5693_v58 }
 0x367   : > { %6470 = vmatmul.mubr.f32.vlgmr.msra.gmra.mrb[6].mxu0 %v7967_v50  ;;  %6512 = vmatmul.mubr.f32.vlgmr.msra.gmra.mrb[6].mxu1 %v7969_v51 }
 0x368   : > { %6793 = vmatpush3.bf16.msra.mxu0 %v8334_v15  ;;  %6817 = vmatpush3.bf16.msra.mxu1 %v8336_v22 }
 0x369   : > { %6795 = vmatprep.subr.bf16.mxu0 %v6794_v33  ;;  %6819 = vmatprep.subr.bf16.mxu1 %v6818_v36 }
 0x36a   : > { %6518 = vmatprep.mubr.f32.mxu0 %v7919_v30  ;;  %6560 = vmatprep.mubr.f32.mxu1 %v7921_v31 }
 0x36b   : > { %6519 = vmatmul.mubr.f32.vlgmr.msra.gmra.mrb[8].mxu0 %v8021_v46  ;;  %6561 = vmatmul.mubr.f32.vlgmr.msra.gmra.mrb[8].mxu1 %v8023_v48 }
 0x36c   : > { %6797 = vmatpush3.bf16.msra.mxu0 %v6794_v33  ;;  %6821 = vmatpush3.bf16.msra.mxu1 %v6818_v36 }
 0x36d   : > { %6799 = vmatprep.subr.bf16.mxu0 %v6798_v41  ;;  %6823 = vmatprep.subr.bf16.mxu1 %v6822_v53 }
 0x36e   : > { %6525 = vmatprep.mubr.f32.mxu0 %v7894_v18  ;;  %6567 = vmatprep.mubr.f32.mxu1 %v7896_v19 }
 0x373   : > { %6526 = vmatmul.mubr.f32.vlgmr.msra.gmra.mrb[8].mxu0 %v7967_v50  ;;  %6568 = vmatmul.mubr.f32.vlgmr.msra.gmra.mrb[8].mxu1 %v7969_v51 }
 0x374   : > { %6801 = vmatpush3.bf16.msra.mxu0 %v6798_v41  ;;  %6825 = vmatpush3.bf16.msra.mxu1 %v6822_v53 }
 0x375   : > { %6803 = vmatprep.subr.bf16.mxu0 %v8334_v15  ;;  %6827 = vmatprep.subr.bf16.mxu1 %v8336_v22 }
 0x376   : > { %6532 = vmatprep.mubr.f32.mxu0 %v7899_v20  ;;  %6574 = vmatprep.mubr.f32.mxu1 %v7902_v21  ;;  %v6303_v30 = vpop.f32.mrb[2].mxu0  ;;  %v6345_v31 = vpop.f32.mrb[2].mxu1  ;;  %v6806_v20 = vpack.c.bf16 %v4778_v11, %v4771_v7  ;;  %v6830_v21 = vpack.c.bf16 %v5280_v12, %v5273_v10  ;;  %v5696_v7 = vand.u32 2147483647, %v5694_v2  ;;  %v5697_v10 = vsel %vm426_vm1, %v5695_v3, 0.0 }
 0x377   : > { %v2496_v46 = vand.u32 2147483647, %v6303_v30  ;;  %v2498_v48 = vand.u32 2147483647, %v6345_v31  ;;  %v1983_v40 = vpop.f32.mrb[3].mxu0  ;;  %v2485_v38 = vpop.f32.mrb[3].mxu1 }
 0x378   : > { %v2495_v39 = vand.u32 2147483647, %v1983_v40  ;;  %v2497_v45 = vand.u32 2147483647, %v2485_v38  ;;  %v5698_v9 = vsel %vm426_vm1, %v5696_v7, 0.0 }
 0x379   : > { %v2500_v54 = vadd.f32 %v2498_v48, %v2496_v46  ;;  %v5699_v11 = vadd.f32 %v5698_v9, %v5697_v10 }
 0x37a   : > { %v2499_v59 = vadd.f32 %v2497_v45, %v2495_v39 }
 0x37b   : > { %6533 = vmatmul.mubr.f32.vlgmr.msra.gmra.mrb[8].mxu0 %v7976_v55  ;;  %6575 = vmatmul.mubr.f32.vlgmr.msra.gmra.mrb[8].mxu1 %v7979_v56  ;;  %v3570_v16 = vmax.f32 %v2500_v54, %v8288_v60 }
 0x37c   : > { %6805 = vmatpush3.bf16.msra.mxu0 %v8334_v15  ;;  %6829 = vmatpush3.bf16.msra.mxu1 %v8336_v22 }
 0x37d   : > { %6807 = vmatprep.subr.bf16.mxu0 %v6806_v20  ;;  %6831 = vmatprep.subr.bf16.mxu1 %v6830_v21 }
 0x37e   : > { %6539 = vmatprep.mubr.f32.mxu0 %v7907_v24  ;;  %6581 = vmatprep.mubr.f32.mxu1 %v7910_v25 }
 0x37f   : > { %5700 = vadd.xlane.f32.xlu0 %v5699_v11 }
 0x383   : > { %6540 = vmatmul.mubr.f32.vlgmr.msra.gmra.mrb[8].mxu0 %v7987_v5  ;;  %6582 = vmatmul.mubr.f32.vlgmr.msra.gmra.mrb[8].mxu1 %v7990_v6 }
 0x384   : > { %6809 = vmatpush3.bf16.msra.mxu0 %v6806_v20  ;;  %6833 = vmatpush3.bf16.msra.mxu1 %v6830_v21 }
 0x385   : > { %6811 = vmatprep.subr.bf16.mxu0 %v8334_v15  ;;  %6835 = vmatprep.subr.bf16.mxu1 %v8336_v22 }
 0x386   : > { %6546 = vmatprep.mubr.f32.mxu0 %v7894_v18  ;;  %6588 = vmatprep.mubr.f32.mxu1 %v7896_v19 }
 0x38b   : > { %6547 = vmatmul.mubr.f32.vlgmr.msra.gmra.mrb[8].mxu0 %v7967_v50  ;;  %6589 = vmatmul.mubr.f32.vlgmr.msra.gmra.mrb[8].mxu1 %v7969_v51 }
 0x38c   : > { %6813 = vmatpush3.bf16.msra.mxu0 %v8334_v15  ;;  %6837 = vmatpush3.bf16.msra.mxu1 %v8336_v22 }
 0x38d   : > { %6553 = vmatprep.mubr.f32.mxu0 %v7894_v18  ;;  %6595 = vmatprep.mubr.f32.mxu1 %v7896_v19  ;;  %v3569_v19 = vmax.f32 %v2499_v59, %v8300_v4 }
 0x393   : > { %6554 = vmatmul.mubr.f32.vlgmr.msra.gmra.mrb[8].mxu0 %v7967_v50  ;;  %6596 = vmatmul.mubr.f32.vlgmr.msra.gmra.mrb[8].mxu1 %v7969_v51 }
 0x3ca   : > { %v6387_v24 = vpop.f32.mrb[4].mxu0  ;;  %v6429_v25 = vpop.f32.mrb[4].mxu1 }
 0x3cb   : > { %v3544_v55 = vand.u32 2147483647, %v6387_v24  ;;  %v3546_v56 = vand.u32 2147483647, %v6429_v25  ;;  %v3031_v5 = vpop.f32.mrb[5].mxu0  ;;  %v3533_v6 = vpop.f32.mrb[5].mxu1 }
 0x3cc   : > { %v3543_v61 = vand.u32 2147483647, %v3031_v5  ;;  %v3545_v62 = vand.u32 2147483647, %v3533_v6 }
 0x3cd   : > { %v3548_v18 = vadd.f32 %v3546_v56, %v3544_v55 }
 0x3ce   : > { %v3547_v50 = vadd.f32 %v3545_v62, %v3543_v61 }
 0x3cf   : > { %v3572_v51 = vsub.f32 %v3548_v18, %v3570_v16 }
 0x3d0   : > { %v3571_v17 = vsub.f32 %v3547_v50, %v3569_v19 }
 0x3d1   : > { %v3574_v28 = vand.u32 2147483647, %v3572_v51 }
 0x3d2   : > { %v3573_v29 = vand.u32 2147483647, %v3571_v17 }
 0x3d3   : > { %v3576_v49 = vsel %vm426_vm1, %v3574_v28, 0.0 }
 0x3d4   : > { %v3575_v52 = vsel %vm426_vm1, %v3573_v29, 0.0 }
 0x3d5   : > { %v3577_v63 = vadd.f32 %v3576_v49, %v3575_v52 }
 0x3d7   : > { %3578 = vadd.xlane.f32.xlu1 %v3577_v63 }
 0x3da   : > { %v3559_v12 = vpop.xlane.xlu0 %3558 }
 0x3db   : > { %v3560_v13 = vrot.slane %v3559_v12, 4 }
 0x3dd   : > { %v3561_v14 = vadd.f32 %v3560_v13, %v3559_v12 }
 0x3df   : > { %v3562_v15 = vrot.slane %v3561_v14, 2 }
 0x3e1   : > { %v3563_v22 = vadd.f32 %v3562_v15, %v3561_v14 }
 0x3e3   : > { %v3564_v23 = vrot.slane %v3563_v22, 1 }
 0x3e5   : > { %v3565_v42 = vadd.f32 %v3564_v23, %v3563_v22 }
 0x3e7   : > { %6938 = vpush %v3565_v42 }
 0x418   : > { %s6939_s30 = spop %6938 }
 0x419   : > { %v3567_v57 = vstv %s6939_s30  ;;  %s7264_s30 = scalar_lea.vmem %s8426_s16, 16 }
 0x41a   : > { %p7265_p5 = scmp.ne.s32.totalorder %s8426_s16, %s7264_s30 }
 0x41c   : > { %p7266_p10 = pnand %p7265_p5, %p8598_p0 }
 0x41e   : > { %p7267_p1 = pneg %p7266_p10 }
 0x43a   : > { %v6471_v43 = vpop.f32.mrb[6].mxu0  ;;  %v6513_v26 = vpop.f32.mrb[6].mxu1 }
 0x43b   : > { %v4638_v32 = vand.u32 2147483647, %v6471_v43  ;;  %v4640_v27 = vand.u32 2147483647, %v6513_v26  ;;  %v4125_v33 = vpop.f32.mrb[7].mxu0  ;;  %v4627_v36 = vpop.f32.mrb[7].mxu1 }
 0x43c   : > { %v4637_v41 = vand.u32 2147483647, %v4125_v33  ;;  %v4639_v53 = vand.u32 2147483647, %v4627_v36 }
 0x43d   : > { %v4642_v30 = vadd.f32 %v4640_v27, %v4638_v32 }
 0x43e   : > { %v4641_v31 = vadd.f32 %v4639_v53, %v4637_v41 }
 0x43f   : > { %v5712_v25 = vmax.f32 %v4642_v30, %v8288_v60  ;;  %v5701_v60 = vpop.xlane.xlu0 %5700 }
 0x440   : > { %v5711_v5 = vmax.f32 %v4641_v31, %v8300_v4  ;;  %v5702_v49 = vrot.slane %v5701_v60, 4 }
 0x442   : > { %v5703_v52 = vadd.f32 %v5702_v49, %v5701_v60 }
 0x444   : > { %v5704_v63 = vrot.slane %v5703_v52, 2 }
 0x446   : > { %v5705_v4 = vadd.f32 %v5704_v63, %v5703_v52 }
 0x448   : > { %v5706_v35 = vrot.slane %v5705_v4, 1 }
 0x44a   : > { %v5707_v34 = vadd.f32 %v5706_v35, %v5705_v4 }
 0x464   : > { %v3579_v46 = vpop.xlane.xlu1 %3578 }
 0x465   : > { %v3580_v48 = vrot.slane %v3579_v46, 4 }
 0x466   : > { %v6555_v40 = vpop.f32.mrb[8].mxu0  ;;  %v6597_v38 = vpop.f32.mrb[8].mxu1 }
 0x467   : > { %v3581_v39 = vadd.f32 %v3580_v48, %v3579_v46  ;;  %v5686_v45 = vand.u32 2147483647, %v6555_v40  ;;  %v5688_v54 = vand.u32 2147483647, %v6597_v38  ;;  %v5173_v59 = vpop.f32.mrb[9].mxu0  ;;  %v5675_v20 = vpop.f32.mrb[9].mxu1 }
 0x468   : > { %v5685_v21 = vand.u32 2147483647, %v5173_v59  ;;  %v5687_v24 = vand.u32 2147483647, %v5675_v20 }
 0x469   : > { %v3582_v55 = vrot.slane %v3581_v39, 2  ;;  %v5690_v56 = vadd.f32 %v5688_v54, %v5686_v45 }
 0x46a   : > { %v5689_v6 = vadd.f32 %v5687_v24, %v5685_v21 }
 0x46b   : > { %v3583_v61 = vadd.f32 %v3582_v55, %v3581_v39  ;;  %v5714_v62 = vsub.f32 %v5690_v56, %v5712_v25 }
 0x46c   : > { %v5713_v16 = vsub.f32 %v5689_v6, %v5711_v5 }
 0x46d   : > { %v3584_v18 = vrot.slane %v3583_v61, 1  ;;  %v5716_v19 = vand.u32 2147483647, %v5714_v62 }
 0x46e   : > { %v5715_v50 = vand.u32 2147483647, %v5713_v16 }
 0x46f   : > { %v3585_v51 = vadd.f32 %v3584_v18, %v3583_v61  ;;  %v5718_v17 = vsel %vm426_vm1, %v5716_v19, 0.0 }
 0x470   : > { %v5717_v28 = vsel %vm426_vm1, %v5715_v50, 0.0 }
 0x471   : > { %6940 = vpush %v3585_v51  ;;  %v5719_v29 = vadd.f32 %v5718_v17, %v5717_v28 }
 0x472   : > { %6942 = vpush %v5707_v34 }
 0x473   : > { %5720 = vadd.xlane.f32.xlu0 %v5719_v29 }
 0x4a2   : > { %s6941_s11 = spop %6940 }
 0x4a3   : > { %s6943_s2 = spop %6942  ;;  %v3587_v10 = vstv %s6941_s11  ;;  %s7438_s11 = smov [#allocation10]  }
 0x4a4   : > { %v5709_v8 = vstv %s6943_s2  ;;  %s7268_s10 = sshll.u32 %s7438_s11, 4  ;;  %s7269_s10 = int_to_ptr.vmem [resolvable:$false] %s7268_s10 }
 0x4a5   : > { %v5710_v3 = vadd.f32 %v5709_v8, %v3567_v57  ;;  %s7270_s2 = scalar_lea.vmem %s7269_s10, 32  ;;  %p7271_p11 = scmp.lt.s32.totalorder %s8426_s16, %s7269_s10 }
 0x4a6   : > { %p7272_p4 = scmp.lt.s32.totalorder %s7270_s2, %s7264_s30 }
 0x4a8   : > { %p7273_p3 = por %p7272_p4, %p7271_p11 }
 0x4aa   : > { %p7274_p13 = pnand %p7273_p3, %p7267_p1 }
 0x500   : > { %v5721_v0 = vpop.xlane.xlu0 %5720 }
 0x501   : > { %v5722_v1 = vrot.slane %v5721_v0, 4 }
 0x503   : > { %v5723_v44 = vadd.f32 %v5722_v1, %v5721_v0 }
 0x505   : > { %v5724_v37 = vrot.slane %v5723_v44, 2 }
 0x507   : > { %v5725_v58 = vadd.f32 %v5724_v37, %v5723_v44 }
 0x509   : > { %v5726_v2 = vrot.slane %v5725_v58, 1 }
 0x50b   : > { %v5727_v7 = vadd.f32 %v5726_v2, %v5725_v58 }
 0x50d   : > { %6944 = vpush %v5727_v7 }
 0x50e   : > { %6946 = vpush %v5710_v3 }
 0x53e   : > { %s6945_s25 = spop %6944 }
 0x53f   : > { %v5729_v9 = vstv %s6945_s25  ;;  %s6947_s15 = spop %6946 }
 0x540   : > { %v5730_v11 = vadd.f32 %v5729_v9, %v3587_v10  ;;  %v5733_v12 = vstv %s6947_s15 }
 0x541   : > { %v5734_v14 = vsel %vm5731_vm4, %v5733_v12, 0.0 }
 0x542   : > { %6948 = vpush %v5730_v11 }
 0x573   : > { %s6949_s18 = spop %6948 }
 0x574   : > { %v5737_v13 = vstv %s6949_s18 }
 0x575   : > { %v5738_v15 = vsel %vm5735_vm5, %v5737_v13, 0.0 }
 0x576   : > { %v5739_v22 = vadd.f32 %v5738_v15, %v5734_v14 }
 0x578   : > { %5740 = vst [vmem:[%s368_s21] sm:$0x1] %v5739_v22 }
 0x579   : > { %7277 = shalt.err (!%p7274_p13)
}
 0x57a   : > { %s7278_s28 = scalar_lea.hbm %s8424_s8, 16  ;;  %s7282_s3 = scalar_lea.hbm %s8597_s13, 64 }
 0x57b   : > { %p7279_p2 = scmp.ne.s32.totalorder %s8424_s8, %s7278_s28  ;;  %p7283_p7 = scmp.lt.u32.totalorder %s8424_s8, %s8597_s13 }
 0x57c   : > { %p7284_p8 = scmp.lt.u32.totalorder %s7282_s3, %s7278_s28  ;;  %p7286_p5 = scmp.lt.u32.totalorder %s7278_s28, %s8424_s8 }
 0x57d   : > { %p7280_p12 = pnand %p7279_p2, %p8598_p0 }
 0x57e   : > { %p7285_p6 = por %p7284_p8, %p7283_p7 }
 0x57f   : > { %p7281_p9 = pneg %p7280_p12 }
 0x580   : > { %p7287_p10 = por %p7286_p5, %p7285_p6 }
 0x582   : > { %p7288_p1 = pnand %p7287_p10, %p7281_p9 }
 0x584   : > { %7291 = shalt.err (!%p7288_p1)
}
 0x585   : > { %6964 = dma.vmem_to_hbm [thread:$0]  (%p8598_p0), %s8426_s16, 16, %s8424_s8, %s5742_s0  }
 0x586 PF: > { %s8599_s24 = sld [smem:[#allocation17_spill]]  ;;  %s8600_s12 = sld [smem:[#allocation28_spill]] }
 0x587   : > { %p6992_p11 = scmp.ge.s32.totalorder %s7426_s6, 2 }
 0x58c   : > { %s5768_s18 = sand.u32 1, %s8599_s24   ;;  %p8601_p4 = scmp.ne.s32.totalorder %s8600_s12, 0 }
 0x58d   : > { %s5769_s21 = scalar_lea.sflag [#allocation4], %s5768_s18 }
 0x58e   : > { %p6984_p3 = pnand %p6992_p11, %p8601_p4 }
 0x590   : > { %7369 = dma.done.wait (!%p6984_p3), %s5769_s21, 16  }
 0x591   : > { %7371 = vsyncadd (!%p6984_p3), %s5769_s21, 4294967280  ;;  %s20_s6 = sadd.s32 1, %s7426_s6   ;;  %s8603_s18 = sld [smem:[#allocation18_spill]] }
 0x592   : > { %p8454_p13 = scmp.ge.s32.totalorder %s20_s6, 6   ;;  %s8604_s24 = sld [smem:[#allocation19_spill]] }
 0x593   : > { %s8605_s14 = smov %s7639_s19  ;;  %s8606_s16 = sld [smem:[#allocation22_spill]] }
 0x594   : > { %s8607_s28 = sld [smem:[#allocation23_spill]]  ;;  %s8608_s29 = sld [smem:[#allocation29_spill]] }
 0x595   : > { %s8609_s30 = sld [smem:[#allocation30_spill]]  ;;  %s8611_s19 = smov %s7382_s20 }
 0x596   : > { %s8612_s20 = smov %s7648_s7  ;;  %s8613_s21 = smov %s7390_s22 }
 0x597   : > { %s8614_s22 = smov %s7394_s23  ;;  %s8615_s23 = smov %s7710_s9 }
 0x598   : > { %s8616_s25 = smov %s7406_s26  ;;  %s8617_s26 = smov %s8605_s14 }
 0x599   : > { %s8618_s27 = smov %s8606_s16  ;;  %19 = sbr.rel (!%p8454_p13) target bundleno = 15 (0xf), region = 116 }
 0x5a0   :  { %5773 = vsyncpa [#allocation3], 1 }
 0x5a1   :  { %5775 = vsyncpa [#allocation3 + $0x1], 1 }
 0x5a2   :  { %5776 = vsyncpa [#allocation6], 1 }
 0x5a3   :  { %5777 = vsyncpa [#allocation4], 1 }
 0x5a4   :  { %5779 = vsyncpa [#allocation4 + $0x1], 1 }

</bundles_post_ra>
